<compile_context>
chip_gen: v5e
topology: v5e:2x2
jax: 0.10.0
libtpu: 0.0.40
codegen_flags: <defaults>
</compile_context>

<pallas_src>
import math

import jax
import jax.numpy as jnp
from jax.experimental import pallas as pl
from jax.experimental.pallas import tpu as pltpu

EMBED_DIM = 128
FF_DIM = 128
NUM_HEADS = 8
HEAD_DIM = EMBED_DIM // NUM_HEADS
LN_EPS = 1e-5
NEG_INF = -1e30


def _layer_norm(x, gamma, beta):
    mu = jnp.mean(x, axis=-1, keepdims=True)
    var = jnp.mean((x - mu) ** 2, axis=-1, keepdims=True)
    return (x - mu) * jax.lax.rsqrt(var + LN_EPS) * gamma + beta


def _gelu_exact(x):
    # torch.nn.GELU() default is the exact (erf) formulation.
    return 0.5 * x * (1.0 + jax.lax.erf(x * (1.0 / math.sqrt(2.0))))


def encoder_block_kernel(
    x_ref, bias_ref,
    wqkv_ref, bqkv_ref, wo_ref, bo_ref,
    g1_ref, be1_ref,
    wf1_ref, bf1_ref, wf2_ref, bf2_ref,
    g2_ref, be2_ref,
    out_ref,
):
    bt, s, e = x_ref.shape
    x = x_ref[...]                                  # (Bt, S, E) f32
    x2 = x.reshape(bt * s, e)                       # (Bt*S, E)  f32
    x2_bf = x2.astype(jnp.bfloat16)

    # ---- fused QKV projection (Q pre-scaled by 1/sqrt(Dh) in the wrapper) --
    qkv = jnp.dot(x2_bf, wqkv_ref[...],
                  preferred_element_type=jnp.float32) + bqkv_ref[...]  # (Bt*S, 3E) f32
    qkv_bf = qkv.astype(jnp.bfloat16).reshape(bt, s, 3 * e)            # (Bt, S, 3E)

    # ---- multi-head self-attention ----------------------------------------
    # additive key bias: 0 on valid keys, -1e30 on padded keys; broadcast once
    # (hoisted out of the per-head loop).
    key_bias = jnp.broadcast_to(bias_ref[...], (bt, s, s))             # (Bt, S, S) f32

    head_outs = []
    for h in range(NUM_HEADS):                      # static loop, static slices
        lo = h * HEAD_DIM
        qh = qkv_bf[:, :, lo:lo + HEAD_DIM]                            # (Bt, S, Dh)
        kh = qkv_bf[:, :, e + lo:e + lo + HEAD_DIM]
        vh = qkv_bf[:, :, 2 * e + lo:2 * e + lo + HEAD_DIM]
        sc = jnp.einsum('bqd,bkd->bqk', qh, kh,
                        preferred_element_type=jnp.float32)            # (Bt, S, S) f32
        sc = sc + key_bias
        sc = sc - jnp.max(sc, axis=-1, keepdims=True)
        p = jnp.exp(sc)
        p = p * pl.reciprocal(jnp.sum(p, axis=-1, keepdims=True), approx=True)
        head_outs.append(
            jnp.einsum('bqk,bkd->bqd', p.astype(jnp.bfloat16), vh,
                       preferred_element_type=jnp.float32))            # (Bt, S, Dh)

    # concat heads along lanes, then ONE output-projection matmul
    o = jnp.concatenate(head_outs, axis=-1).reshape(bt * s, e)         # (Bt*S, E) f32
    attn = jnp.dot(o.astype(jnp.bfloat16), wo_ref[...],
                   preferred_element_type=jnp.float32) + bo_ref[...]

    # ---- residual + layernorm 1 --------------------------------------------
    h1 = _layer_norm(attn + x2, g1_ref[...], be1_ref[...])

    # ---- feed-forward -------------------------------------------------------
    ff = jnp.dot(h1.astype(jnp.bfloat16), wf1_ref[...],
                 preferred_element_type=jnp.float32) + bf1_ref[...]
    ff = _gelu_exact(ff)
    ff = jnp.dot(ff.astype(jnp.bfloat16), wf2_ref[...],
                 preferred_element_type=jnp.float32) + bf2_ref[...]

    # ---- residual + layernorm 2 ---------------------------------------------
    h2 = _layer_norm(h1 + ff, g2_ref[...], be2_ref[...])

    # ---- final residual (as in the PyTorch forward) --------------------------
    out_ref[...] = (x2 + h2).reshape(bt, s, e)


def _pick_batch_tile(B, max_bt=8):
    """Largest divisor of B that is <= max_bt while keeping >= 2 grid steps
    (so both TensorCores of a megacore/v7x chip get work). Falls back to 1."""
    best = 1
    for bt in range(1, min(max_bt, B) + 1):
        if B % bt == 0 and (B // bt >= 2 or B == 1):
            best = bt
    return best


def prepare_params(params):
    """Fuse Q/K/V weights into (E, 3E), fold 1/sqrt(head_dim) into the Q
    projection, and cast matmul weights to bf16 (biases / LN params stay f32)."""
    (wq, bq, wk, bk, wv, bv, wo, bo,
     g1, be1, wf1, bf1, wf2, bf2, g2, be2) = params
    scale = 1.0 / math.sqrt(HEAD_DIM)
    wqkv = jnp.concatenate([wq * scale, wk, wv], axis=1).astype(jnp.bfloat16)
    bqkv = jnp.concatenate([bq * scale, bk, bv], axis=1).astype(jnp.float32)
    return (wqkv, bqkv,
            wo.astype(jnp.bfloat16), bo,
            g1, be1,
            wf1.astype(jnp.bfloat16), bf1,
            wf2.astype(jnp.bfloat16), bf2,
            g2, be2)


def encoder_block(x, key_padding_mask, params):
    """x: (B, S, E) f32, key_padding_mask: (B, S) bool (True = padded key)."""
    B, S, E = x.shape
    assert E == EMBED_DIM

    # Precompute the additive key bias in the wrapper (one-time, fused by XLA).
    key_bias = jnp.where(key_padding_mask, NEG_INF, 0.0).astype(jnp.float32)
    key_bias = key_bias.reshape(B, 1, S)

    (wqkv, bqkv, wo, bo, g1, be1,
     wf1, bf1, wf2, bf2, g2, be2) = prepare_params(params)

    bt = _pick_batch_tile(B)
    grid = (B // bt,)

    def full_spec(arr):
        nd = arr.ndim
        return pl.BlockSpec(arr.shape, lambda b, _nd=nd: (0,) * _nd)

    grid_spec = pltpu.PrefetchScalarGridSpec(
        num_scalar_prefetch=0,
        grid=grid,
        in_specs=[
            pl.BlockSpec((bt, S, E), lambda b: (b, 0, 0)),   # x
            pl.BlockSpec((bt, 1, S), lambda b: (b, 0, 0)),   # additive key bias
            full_spec(wqkv), full_spec(bqkv),
            full_spec(wo), full_spec(bo),
            full_spec(g1), full_spec(be1),
            full_spec(wf1), full_spec(bf1),
            full_spec(wf2), full_spec(bf2),
            full_spec(g2), full_spec(be2),
        ],
        out_specs=pl.BlockSpec((bt, S, E), lambda b: (b, 0, 0)),
    )

    out = pl.pallas_call(
        encoder_block_kernel,
        out_shape=jax.ShapeDtypeStruct((B, S, E), jnp.float32),
        grid_spec=grid_spec,
        compiler_params=pltpu.CompilerParams(
            dimension_semantics=("parallel",)),
    )(x, key_bias, wqkv, bqkv, wo, bo, g1, be1, wf1, bf1, wf2, bf2, g2, be2)
    # Module returns (output, mask) unchanged.
    return out, key_padding_mask


def encoder_block_reference(x, key_padding_mask, params):
    """Pure-JAX f32 reference mirroring torch.nn.MultiheadAttention semantics."""
    (wq, bq, wk, bk, wv, bv, wo, bo,
     g1, be1, wf1, bf1, wf2, bf2, g2, be2) = params
    B, S, E = x.shape
    q = x @ wq + bq
    k = x @ wk + bk
    v = x @ wv + bv
    qh = q.reshape(B, S, NUM_HEADS, HEAD_DIM).transpose(0, 2, 1, 3)
    kh = k.reshape(B, S, NUM_HEADS, HEAD_DIM).transpose(0, 2, 1, 3)
    vh = v.reshape(B, S, NUM_HEADS, HEAD_DIM).transpose(0, 2, 1, 3)
    s = jnp.einsum("bhqd,bhkd->bhqk", qh, kh) / math.sqrt(HEAD_DIM)
    s = jnp.where(key_padding_mask[:, None, None, :], NEG_INF, s)
    p = jax.nn.softmax(s, axis=-1)
    o = jnp.einsum("bhqk,bhkd->bhqd", p, vh)
    o = o.transpose(0, 2, 1, 3).reshape(B, S, E)
    attn = o @ wo + bo
    h1 = _layer_norm(attn + x, g1, be1)
    ff = _gelu_exact(h1 @ wf1 + bf1) @ wf2 + bf2
    h2 = _layer_norm(h1 + ff, g2, be2)
    return x + h2


def make_params(key):
    ks = jax.random.split(key, 8)
    scale = 0.05
    wq = jax.random.normal(ks[0], (EMBED_DIM, EMBED_DIM), jnp.float32) * scale
    wk = jax.random.normal(ks[1], (EMBED_DIM, EMBED_DIM), jnp.float32) * scale
    wv = jax.random.normal(ks[2], (EMBED_DIM, EMBED_DIM), jnp.float32) * scale
    wo = jax.random.normal(ks[3], (EMBED_DIM, EMBED_DIM), jnp.float32) * scale
    wf1 = jax.random.normal(ks[4], (EMBED_DIM, FF_DIM), jnp.float32) * scale
    wf2 = jax.random.normal(ks[5], (FF_DIM, EMBED_DIM), jnp.float32) * scale
    bq = jax.random.normal(ks[6], (1, EMBED_DIM), jnp.float32) * 0.01
    bk = jnp.zeros((1, EMBED_DIM), jnp.float32)
    bv = jax.random.normal(ks[7], (1, EMBED_DIM), jnp.float32) * 0.01
    bo = jnp.zeros((1, EMBED_DIM), jnp.float32)
    bf1 = jnp.full((1, FF_DIM), 0.01, jnp.float32)
    bf2 = jnp.full((1, EMBED_DIM), -0.01, jnp.float32)
    g1 = jnp.ones((1, EMBED_DIM), jnp.float32) * 1.1
    be1 = jnp.ones((1, EMBED_DIM), jnp.float32) * 0.05
    g2 = jnp.ones((1, EMBED_DIM), jnp.float32) * 0.9
    be2 = jnp.ones((1, EMBED_DIM), jnp.float32) * -0.05
    return (wq, bq, wk, bk, wv, bv, wo, bo,
            g1, be1, wf1, bf1, wf2, bf2, g2, be2)


if __name__ == "__main__":
    key = jax.random.PRNGKey(0)
    k_x, k_p = jax.random.split(key)

    B, S = 4, 8
    x = jax.random.normal(k_x, (B, S, EMBED_DIM), jnp.float32)
    # key_padding_mask: True = padded position (ignored as attention key).
    mask = jnp.zeros((B, S), dtype=bool)
    mask = mask.at[0, S - 2:].set(True)   # pad last 2 keys of batch element 0
    mask = mask.at[2, S - 3:].set(True)   # pad last 3 keys of batch element 2

    params = make_params(k_p)

    out, out_mask = encoder_block(x, mask, params)
    out = jax.block_until_ready(out)

    ref = encoder_block_reference(x, mask, params)
    assert out.shape == (B, S, EMBED_DIM)
    max_err = float(jnp.max(jnp.abs(out - ref)))
    # bf16 MXU operands with f32 accumulation vs an all-f32 reference.
    assert jnp.allclose(out, ref, atol=2e-2, rtol=2e-2), max_err
    assert bool(jnp.all(out_mask == mask))

    print("KERNEL_OK")
</pallas_src>

<mosaic_0001>
module attributes {stable_mosaic.version = 11 : i64} {
  func.func @encoder_block_kernel(%arg0: i32, %arg1: memref<2x8x128xf32, #tpu.memory_space<vmem>>, %arg2: memref<2x1x8xf32, #tpu.memory_space<vmem>>, %arg3: memref<128x384xbf16, #tpu.memory_space<vmem>>, %arg4: memref<1x384xf32, #tpu.memory_space<vmem>>, %arg5: memref<128x128xbf16, #tpu.memory_space<vmem>>, %arg6: memref<1x128xf32, #tpu.memory_space<vmem>>, %arg7: memref<1x128xf32, #tpu.memory_space<vmem>>, %arg8: memref<1x128xf32, #tpu.memory_space<vmem>>, %arg9: memref<128x128xbf16, #tpu.memory_space<vmem>>, %arg10: memref<1x128xf32, #tpu.memory_space<vmem>>, %arg11: memref<128x128xbf16, #tpu.memory_space<vmem>>, %arg12: memref<1x128xf32, #tpu.memory_space<vmem>>, %arg13: memref<1x128xf32, #tpu.memory_space<vmem>>, %arg14: memref<1x128xf32, #tpu.memory_space<vmem>>, %arg15: memref<2x8x128xf32, #tpu.memory_space<vmem>>) attributes {dimension_semantics = [#tpu.dimension_semantics<parallel>], iteration_bounds = array<i64: 2>, scalar_prefetch = 0 : i64, scratch_operands = 0 : i64, tpu.core_type = #tpu.core_type<tc>, window_params = [{transform_indices = @transform_0, window_bounds = array<i64: 2, 8, 128>}, {transform_indices = @transform_1, window_bounds = array<i64: 2, 1, 8>}, {pipeline_mode = #tpu.pipeline_mode<synchronous>, transform_indices = @transform_2, window_bounds = array<i64: 128, 384>}, {pipeline_mode = #tpu.pipeline_mode<synchronous>, transform_indices = @transform_3, window_bounds = array<i64: 1, 384>}, {pipeline_mode = #tpu.pipeline_mode<synchronous>, transform_indices = @transform_4, window_bounds = array<i64: 128, 128>}, {pipeline_mode = #tpu.pipeline_mode<synchronous>, transform_indices = @transform_5, window_bounds = array<i64: 1, 128>}, {pipeline_mode = #tpu.pipeline_mode<synchronous>, transform_indices = @transform_6, window_bounds = array<i64: 1, 128>}, {pipeline_mode = #tpu.pipeline_mode<synchronous>, transform_indices = @transform_7, window_bounds = array<i64: 1, 128>}, {pipeline_mode = #tpu.pipeline_mode<synchronous>, transform_indices = @transform_8, window_bounds = array<i64: 128, 128>}, {pipeline_mode = #tpu.pipeline_mode<synchronous>, transform_indices = @transform_9, window_bounds = array<i64: 1, 128>}, {pipeline_mode = #tpu.pipeline_mode<synchronous>, transform_indices = @transform_10, window_bounds = array<i64: 128, 128>}, {pipeline_mode = #tpu.pipeline_mode<synchronous>, transform_indices = @transform_11, window_bounds = array<i64: 1, 128>}, {pipeline_mode = #tpu.pipeline_mode<synchronous>, transform_indices = @transform_12, window_bounds = array<i64: 1, 128>}, {pipeline_mode = #tpu.pipeline_mode<synchronous>, transform_indices = @transform_13, window_bounds = array<i64: 1, 128>}, {transform_indices = @transform_14, window_bounds = array<i64: 2, 8, 128>}]} {
    %c0 = arith.constant 0 : index
    %c0_0 = arith.constant 0 : index
    %c0_1 = arith.constant 0 : index
    %0 = vector.load %arg1[%c0, %c0_0, %c0_1] : memref<2x8x128xf32, #tpu.memory_space<vmem>>, vector<2x8x128xf32>
    %1 = vector.shape_cast %0 : vector<2x8x128xf32> to vector<16x128xf32>
    %2 = arith.truncf %1 : vector<16x128xf32> to vector<16x128xbf16>
    %c0_2 = arith.constant 0 : index
    %c0_3 = arith.constant 0 : index
    %3 = vector.load %arg3[%c0_2, %c0_3] : memref<128x384xbf16, #tpu.memory_space<vmem>>, vector<128x384xbf16>
    %cst = arith.constant dense<0.000000e+00> : vector<16x384xf32>
    %4 = tpu.matmul %2, %3, %cst {dimension_numbers = #tpu.dot_dimension_numbers<[1], [0], [0], [1], [0, 0, 1, 1], [], []>} : vector<16x128xbf16>, vector<128x384xbf16>, vector<16x384xf32> -> vector<16x384xf32>
    %c0_4 = arith.constant 0 : index
    %c0_5 = arith.constant 0 : index
    %5 = vector.load %arg4[%c0_4, %c0_5] : memref<1x384xf32, #tpu.memory_space<vmem>>, vector<1x384xf32>
    %6 = vector.broadcast %5 : vector<1x384xf32> to vector<16x384xf32>
    %7 = arith.addf %4, %6 : vector<16x384xf32>
    %8 = arith.truncf %7 : vector<16x384xf32> to vector<16x384xbf16>
    %9 = vector.shape_cast %8 : vector<16x384xbf16> to vector<2x8x384xbf16>
    %c0_6 = arith.constant 0 : index
    %c0_7 = arith.constant 0 : index
    %c0_8 = arith.constant 0 : index
    %10 = vector.load %arg2[%c0_6, %c0_7, %c0_8] : memref<2x1x8xf32, #tpu.memory_space<vmem>>, vector<2x1x8xf32>
    %11 = vector.shape_cast %10 : vector<2x1x8xf32> to vector<2x1x8xf32>
    %12 = vector.broadcast %11 : vector<2x1x8xf32> to vector<2x8x8xf32>
    %13 = vector.extract_strided_slice %9 {offsets = [0, 0, 0], sizes = [2, 8, 16], strides = [1, 1, 1]} : vector<2x8x384xbf16> to vector<2x8x16xbf16>
    %14 = vector.extract_strided_slice %9 {offsets = [0, 0, 128], sizes = [2, 8, 16], strides = [1, 1, 1]} : vector<2x8x384xbf16> to vector<2x8x16xbf16>
    %15 = vector.extract_strided_slice %9 {offsets = [0, 0, 256], sizes = [2, 8, 16], strides = [1, 1, 1]} : vector<2x8x384xbf16> to vector<2x8x16xbf16>
    "tpu.trace_start"() <{level = 10 : i32, message = "bqd,bkd->bqk"}> : () -> ()
    %cst_9 = arith.constant dense<0.000000e+00> : vector<2x8x8xf32>
    %16 = tpu.matmul %13, %14, %cst_9 {dimension_numbers = #tpu.dot_dimension_numbers<[2], [2], [1], [1], [0, 0, 0, 1, 1, 1], [0], [0]>} : vector<2x8x16xbf16>, vector<2x8x16xbf16>, vector<2x8x8xf32> -> vector<2x8x8xf32>
    "tpu.trace_stop"() : () -> ()
    %17 = arith.addf %16, %12 : vector<2x8x8xf32>
    %cst_10 = arith.constant dense<0xFF800000> : vector<2x8xf32>
    %18 = vector.multi_reduction <maximumf>, %17, %cst_10 [2] : vector<2x8x8xf32> to vector<2x8xf32>
    %19 = vector.shape_cast %18 : vector<2x8xf32> to vector<2x8x1xf32>
    %20 = vector.broadcast %19 : vector<2x8x1xf32> to vector<2x8x8xf32>
    %21 = arith.subf %17, %20 : vector<2x8x8xf32>
    %22 = math.exp %21 : vector<2x8x8xf32>
    %cst_11 = arith.constant dense<0.000000e+00> : vector<2x8xf32>
    %23 = vector.multi_reduction <add>, %22, %cst_11 [2] : vector<2x8x8xf32> to vector<2x8xf32>
    %24 = vector.shape_cast %23 : vector<2x8xf32> to vector<2x8x1xf32>
    %25 = tpu.reciprocal %24 {approx = true} : vector<2x8x1xf32> -> vector<2x8x1xf32>
    %26 = vector.broadcast %25 : vector<2x8x1xf32> to vector<2x8x8xf32>
    %27 = arith.mulf %22, %26 : vector<2x8x8xf32>
    %28 = arith.truncf %27 : vector<2x8x8xf32> to vector<2x8x8xbf16>
    "tpu.trace_start"() <{level = 10 : i32, message = "bqk,bkd->bqd"}> : () -> ()
    %cst_12 = arith.constant dense<0.000000e+00> : vector<2x8x16xf32>
    %29 = tpu.matmul %28, %15, %cst_12 {dimension_numbers = #tpu.dot_dimension_numbers<[2], [1], [1], [2], [0, 0, 0, 1, 1, 2], [0], [0]>} : vector<2x8x8xbf16>, vector<2x8x16xbf16>, vector<2x8x16xf32> -> vector<2x8x16xf32>
    "tpu.trace_stop"() : () -> ()
    %30 = vector.extract_strided_slice %9 {offsets = [0, 0, 16], sizes = [2, 8, 16], strides = [1, 1, 1]} : vector<2x8x384xbf16> to vector<2x8x16xbf16>
    %31 = vector.extract_strided_slice %9 {offsets = [0, 0, 144], sizes = [2, 8, 16], strides = [1, 1, 1]} : vector<2x8x384xbf16> to vector<2x8x16xbf16>
    %32 = vector.extract_strided_slice %9 {offsets = [0, 0, 272], sizes = [2, 8, 16], strides = [1, 1, 1]} : vector<2x8x384xbf16> to vector<2x8x16xbf16>
    "tpu.trace_start"() <{level = 10 : i32, message = "bqd,bkd->bqk"}> : () -> ()
    %cst_13 = arith.constant dense<0.000000e+00> : vector<2x8x8xf32>
    %33 = tpu.matmul %30, %31, %cst_13 {dimension_numbers = #tpu.dot_dimension_numbers<[2], [2], [1], [1], [0, 0, 0, 1, 1, 1], [0], [0]>} : vector<2x8x16xbf16>, vector<2x8x16xbf16>, vector<2x8x8xf32> -> vector<2x8x8xf32>
    "tpu.trace_stop"() : () -> ()
    %34 = arith.addf %33, %12 : vector<2x8x8xf32>
    %cst_14 = arith.constant dense<0xFF800000> : vector<2x8xf32>
    %35 = vector.multi_reduction <maximumf>, %34, %cst_14 [2] : vector<2x8x8xf32> to vector<2x8xf32>
    %36 = vector.shape_cast %35 : vector<2x8xf32> to vector<2x8x1xf32>
    %37 = vector.broadcast %36 : vector<2x8x1xf32> to vector<2x8x8xf32>
    %38 = arith.subf %34, %37 : vector<2x8x8xf32>
    %39 = math.exp %38 : vector<2x8x8xf32>
    %cst_15 = arith.constant dense<0.000000e+00> : vector<2x8xf32>
    %40 = vector.multi_reduction <add>, %39, %cst_15 [2] : vector<2x8x8xf32> to vector<2x8xf32>
    %41 = vector.shape_cast %40 : vector<2x8xf32> to vector<2x8x1xf32>
    %42 = tpu.reciprocal %41 {approx = true} : vector<2x8x1xf32> -> vector<2x8x1xf32>
    %43 = vector.broadcast %42 : vector<2x8x1xf32> to vector<2x8x8xf32>
    %44 = arith.mulf %39, %43 : vector<2x8x8xf32>
    %45 = arith.truncf %44 : vector<2x8x8xf32> to vector<2x8x8xbf16>
    "tpu.trace_start"() <{level = 10 : i32, message = "bqk,bkd->bqd"}> : () -> ()
    %cst_16 = arith.constant dense<0.000000e+00> : vector<2x8x16xf32>
    %46 = tpu.matmul %45, %32, %cst_16 {dimension_numbers = #tpu.dot_dimension_numbers<[2], [1], [1], [2], [0, 0, 0, 1, 1, 2], [0], [0]>} : vector<2x8x8xbf16>, vector<2x8x16xbf16>, vector<2x8x16xf32> -> vector<2x8x16xf32>
    "tpu.trace_stop"() : () -> ()
    %47 = vector.extract_strided_slice %9 {offsets = [0, 0, 32], sizes = [2, 8, 16], strides = [1, 1, 1]} : vector<2x8x384xbf16> to vector<2x8x16xbf16>
    %48 = vector.extract_strided_slice %9 {offsets = [0, 0, 160], sizes = [2, 8, 16], strides = [1, 1, 1]} : vector<2x8x384xbf16> to vector<2x8x16xbf16>
    %49 = vector.extract_strided_slice %9 {offsets = [0, 0, 288], sizes = [2, 8, 16], strides = [1, 1, 1]} : vector<2x8x384xbf16> to vector<2x8x16xbf16>
    "tpu.trace_start"() <{level = 10 : i32, message = "bqd,bkd->bqk"}> : () -> ()
    %cst_17 = arith.constant dense<0.000000e+00> : vector<2x8x8xf32>
    %50 = tpu.matmul %47, %48, %cst_17 {dimension_numbers = #tpu.dot_dimension_numbers<[2], [2], [1], [1], [0, 0, 0, 1, 1, 1], [0], [0]>} : vector<2x8x16xbf16>, vector<2x8x16xbf16>, vector<2x8x8xf32> -> vector<2x8x8xf32>
    "tpu.trace_stop"() : () -> ()
    %51 = arith.addf %50, %12 : vector<2x8x8xf32>
    %cst_18 = arith.constant dense<0xFF800000> : vector<2x8xf32>
    %52 = vector.multi_reduction <maximumf>, %51, %cst_18 [2] : vector<2x8x8xf32> to vector<2x8xf32>
    %53 = vector.shape_cast %52 : vector<2x8xf32> to vector<2x8x1xf32>
    %54 = vector.broadcast %53 : vector<2x8x1xf32> to vector<2x8x8xf32>
    %55 = arith.subf %51, %54 : vector<2x8x8xf32>
    %56 = math.exp %55 : vector<2x8x8xf32>
    %cst_19 = arith.constant dense<0.000000e+00> : vector<2x8xf32>
    %57 = vector.multi_reduction <add>, %56, %cst_19 [2] : vector<2x8x8xf32> to vector<2x8xf32>
    %58 = vector.shape_cast %57 : vector<2x8xf32> to vector<2x8x1xf32>
    %59 = tpu.reciprocal %58 {approx = true} : vector<2x8x1xf32> -> vector<2x8x1xf32>
    %60 = vector.broadcast %59 : vector<2x8x1xf32> to vector<2x8x8xf32>
    %61 = arith.mulf %56, %60 : vector<2x8x8xf32>
    %62 = arith.truncf %61 : vector<2x8x8xf32> to vector<2x8x8xbf16>
    "tpu.trace_start"() <{level = 10 : i32, message = "bqk,bkd->bqd"}> : () -> ()
    %cst_20 = arith.constant dense<0.000000e+00> : vector<2x8x16xf32>
    %63 = tpu.matmul %62, %49, %cst_20 {dimension_numbers = #tpu.dot_dimension_numbers<[2], [1], [1], [2], [0, 0, 0, 1, 1, 2], [0], [0]>} : vector<2x8x8xbf16>, vector<2x8x16xbf16>, vector<2x8x16xf32> -> vector<2x8x16xf32>
    "tpu.trace_stop"() : () -> ()
    %64 = vector.extract_strided_slice %9 {offsets = [0, 0, 48], sizes = [2, 8, 16], strides = [1, 1, 1]} : vector<2x8x384xbf16> to vector<2x8x16xbf16>
    %65 = vector.extract_strided_slice %9 {offsets = [0, 0, 176], sizes = [2, 8, 16], strides = [1, 1, 1]} : vector<2x8x384xbf16> to vector<2x8x16xbf16>
    %66 = vector.extract_strided_slice %9 {offsets = [0, 0, 304], sizes = [2, 8, 16], strides = [1, 1, 1]} : vector<2x8x384xbf16> to vector<2x8x16xbf16>
    "tpu.trace_start"() <{level = 10 : i32, message = "bqd,bkd->bqk"}> : () -> ()
    %cst_21 = arith.constant dense<0.000000e+00> : vector<2x8x8xf32>
    %67 = tpu.matmul %64, %65, %cst_21 {dimension_numbers = #tpu.dot_dimension_numbers<[2], [2], [1], [1], [0, 0, 0, 1, 1, 1], [0], [0]>} : vector<2x8x16xbf16>, vector<2x8x16xbf16>, vector<2x8x8xf32> -> vector<2x8x8xf32>
    "tpu.trace_stop"() : () -> ()
    %68 = arith.addf %67, %12 : vector<2x8x8xf32>
    %cst_22 = arith.constant dense<0xFF800000> : vector<2x8xf32>
    %69 = vector.multi_reduction <maximumf>, %68, %cst_22 [2] : vector<2x8x8xf32> to vector<2x8xf32>
    %70 = vector.shape_cast %69 : vector<2x8xf32> to vector<2x8x1xf32>
    %71 = vector.broadcast %70 : vector<2x8x1xf32> to vector<2x8x8xf32>
    %72 = arith.subf %68, %71 : vector<2x8x8xf32>
    %73 = math.exp %72 : vector<2x8x8xf32>
    %cst_23 = arith.constant dense<0.000000e+00> : vector<2x8xf32>
    %74 = vector.multi_reduction <add>, %73, %cst_23 [2] : vector<2x8x8xf32> to vector<2x8xf32>
    %75 = vector.shape_cast %74 : vector<2x8xf32> to vector<2x8x1xf32>
    %76 = tpu.reciprocal %75 {approx = true} : vector<2x8x1xf32> -> vector<2x8x1xf32>
    %77 = vector.broadcast %76 : vector<2x8x1xf32> to vector<2x8x8xf32>
    %78 = arith.mulf %73, %77 : vector<2x8x8xf32>
    %79 = arith.truncf %78 : vector<2x8x8xf32> to vector<2x8x8xbf16>
    "tpu.trace_start"() <{level = 10 : i32, message = "bqk,bkd->bqd"}> : () -> ()
    %cst_24 = arith.constant dense<0.000000e+00> : vector<2x8x16xf32>
    %80 = tpu.matmul %79, %66, %cst_24 {dimension_numbers = #tpu.dot_dimension_numbers<[2], [1], [1], [2], [0, 0, 0, 1, 1, 2], [0], [0]>} : vector<2x8x8xbf16>, vector<2x8x16xbf16>, vector<2x8x16xf32> -> vector<2x8x16xf32>
    "tpu.trace_stop"() : () -> ()
    %81 = vector.extract_strided_slice %9 {offsets = [0, 0, 64], sizes = [2, 8, 16], strides = [1, 1, 1]} : vector<2x8x384xbf16> to vector<2x8x16xbf16>
    %82 = vector.extract_strided_slice %9 {offsets = [0, 0, 192], sizes = [2, 8, 16], strides = [1, 1, 1]} : vector<2x8x384xbf16> to vector<2x8x16xbf16>
    %83 = vector.extract_strided_slice %9 {offsets = [0, 0, 320], sizes = [2, 8, 16], strides = [1, 1, 1]} : vector<2x8x384xbf16> to vector<2x8x16xbf16>
    "tpu.trace_start"() <{level = 10 : i32, message = "bqd,bkd->bqk"}> : () -> ()
    %cst_25 = arith.constant dense<0.000000e+00> : vector<2x8x8xf32>
    %84 = tpu.matmul %81, %82, %cst_25 {dimension_numbers = #tpu.dot_dimension_numbers<[2], [2], [1], [1], [0, 0, 0, 1, 1, 1], [0], [0]>} : vector<2x8x16xbf16>, vector<2x8x16xbf16>, vector<2x8x8xf32> -> vector<2x8x8xf32>
    "tpu.trace_stop"() : () -> ()
    %85 = arith.addf %84, %12 : vector<2x8x8xf32>
    %cst_26 = arith.constant dense<0xFF800000> : vector<2x8xf32>
    %86 = vector.multi_reduction <maximumf>, %85, %cst_26 [2] : vector<2x8x8xf32> to vector<2x8xf32>
    %87 = vector.shape_cast %86 : vector<2x8xf32> to vector<2x8x1xf32>
    %88 = vector.broadcast %87 : vector<2x8x1xf32> to vector<2x8x8xf32>
    %89 = arith.subf %85, %88 : vector<2x8x8xf32>
    %90 = math.exp %89 : vector<2x8x8xf32>
    %cst_27 = arith.constant dense<0.000000e+00> : vector<2x8xf32>
    %91 = vector.multi_reduction <add>, %90, %cst_27 [2] : vector<2x8x8xf32> to vector<2x8xf32>
    %92 = vector.shape_cast %91 : vector<2x8xf32> to vector<2x8x1xf32>
    %93 = tpu.reciprocal %92 {approx = true} : vector<2x8x1xf32> -> vector<2x8x1xf32>
    %94 = vector.broadcast %93 : vector<2x8x1xf32> to vector<2x8x8xf32>
    %95 = arith.mulf %90, %94 : vector<2x8x8xf32>
    %96 = arith.truncf %95 : vector<2x8x8xf32> to vector<2x8x8xbf16>
    "tpu.trace_start"() <{level = 10 : i32, message = "bqk,bkd->bqd"}> : () -> ()
    %cst_28 = arith.constant dense<0.000000e+00> : vector<2x8x16xf32>
    %97 = tpu.matmul %96, %83, %cst_28 {dimension_numbers = #tpu.dot_dimension_numbers<[2], [1], [1], [2], [0, 0, 0, 1, 1, 2], [0], [0]>} : vector<2x8x8xbf16>, vector<2x8x16xbf16>, vector<2x8x16xf32> -> vector<2x8x16xf32>
    "tpu.trace_stop"() : () -> ()
    %98 = vector.extract_strided_slice %9 {offsets = [0, 0, 80], sizes = [2, 8, 16], strides = [1, 1, 1]} : vector<2x8x384xbf16> to vector<2x8x16xbf16>
    %99 = vector.extract_strided_slice %9 {offsets = [0, 0, 208], sizes = [2, 8, 16], strides = [1, 1, 1]} : vector<2x8x384xbf16> to vector<2x8x16xbf16>
    %100 = vector.extract_strided_slice %9 {offsets = [0, 0, 336], sizes = [2, 8, 16], strides = [1, 1, 1]} : vector<2x8x384xbf16> to vector<2x8x16xbf16>
    "tpu.trace_start"() <{level = 10 : i32, message = "bqd,bkd->bqk"}> : () -> ()
    %cst_29 = arith.constant dense<0.000000e+00> : vector<2x8x8xf32>
    %101 = tpu.matmul %98, %99, %cst_29 {dimension_numbers = #tpu.dot_dimension_numbers<[2], [2], [1], [1], [0, 0, 0, 1, 1, 1], [0], [0]>} : vector<2x8x16xbf16>, vector<2x8x16xbf16>, vector<2x8x8xf32> -> vector<2x8x8xf32>
    "tpu.trace_stop"() : () -> ()
    %102 = arith.addf %101, %12 : vector<2x8x8xf32>
    %cst_30 = arith.constant dense<0xFF800000> : vector<2x8xf32>
    %103 = vector.multi_reduction <maximumf>, %102, %cst_30 [2] : vector<2x8x8xf32> to vector<2x8xf32>
    %104 = vector.shape_cast %103 : vector<2x8xf32> to vector<2x8x1xf32>
    %105 = vector.broadcast %104 : vector<2x8x1xf32> to vector<2x8x8xf32>
    %106 = arith.subf %102, %105 : vector<2x8x8xf32>
    %107 = math.exp %106 : vector<2x8x8xf32>
    %cst_31 = arith.constant dense<0.000000e+00> : vector<2x8xf32>
    %108 = vector.multi_reduction <add>, %107, %cst_31 [2] : vector<2x8x8xf32> to vector<2x8xf32>
    %109 = vector.shape_cast %108 : vector<2x8xf32> to vector<2x8x1xf32>
    %110 = tpu.reciprocal %109 {approx = true} : vector<2x8x1xf32> -> vector<2x8x1xf32>
    %111 = vector.broadcast %110 : vector<2x8x1xf32> to vector<2x8x8xf32>
    %112 = arith.mulf %107, %111 : vector<2x8x8xf32>
    %113 = arith.truncf %112 : vector<2x8x8xf32> to vector<2x8x8xbf16>
    "tpu.trace_start"() <{level = 10 : i32, message = "bqk,bkd->bqd"}> : () -> ()
    %cst_32 = arith.constant dense<0.000000e+00> : vector<2x8x16xf32>
    %114 = tpu.matmul %113, %100, %cst_32 {dimension_numbers = #tpu.dot_dimension_numbers<[2], [1], [1], [2], [0, 0, 0, 1, 1, 2], [0], [0]>} : vector<2x8x8xbf16>, vector<2x8x16xbf16>, vector<2x8x16xf32> -> vector<2x8x16xf32>
    "tpu.trace_stop"() : () -> ()
    %115 = vector.extract_strided_slice %9 {offsets = [0, 0, 96], sizes = [2, 8, 16], strides = [1, 1, 1]} : vector<2x8x384xbf16> to vector<2x8x16xbf16>
    %116 = vector.extract_strided_slice %9 {offsets = [0, 0, 224], sizes = [2, 8, 16], strides = [1, 1, 1]} : vector<2x8x384xbf16> to vector<2x8x16xbf16>
    %117 = vector.extract_strided_slice %9 {offsets = [0, 0, 352], sizes = [2, 8, 16], strides = [1, 1, 1]} : vector<2x8x384xbf16> to vector<2x8x16xbf16>
    "tpu.trace_start"() <{level = 10 : i32, message = "bqd,bkd->bqk"}> : () -> ()
    %cst_33 = arith.constant dense<0.000000e+00> : vector<2x8x8xf32>
    %118 = tpu.matmul %115, %116, %cst_33 {dimension_numbers = #tpu.dot_dimension_numbers<[2], [2], [1], [1], [0, 0, 0, 1, 1, 1], [0], [0]>} : vector<2x8x16xbf16>, vector<2x8x16xbf16>, vector<2x8x8xf32> -> vector<2x8x8xf32>
    "tpu.trace_stop"() : () -> ()
    %119 = arith.addf %118, %12 : vector<2x8x8xf32>
    %cst_34 = arith.constant dense<0xFF800000> : vector<2x8xf32>
    %120 = vector.multi_reduction <maximumf>, %119, %cst_34 [2] : vector<2x8x8xf32> to vector<2x8xf32>
    %121 = vector.shape_cast %120 : vector<2x8xf32> to vector<2x8x1xf32>
    %122 = vector.broadcast %121 : vector<2x8x1xf32> to vector<2x8x8xf32>
    %123 = arith.subf %119, %122 : vector<2x8x8xf32>
    %124 = math.exp %123 : vector<2x8x8xf32>
    %cst_35 = arith.constant dense<0.000000e+00> : vector<2x8xf32>
    %125 = vector.multi_reduction <add>, %124, %cst_35 [2] : vector<2x8x8xf32> to vector<2x8xf32>
    %126 = vector.shape_cast %125 : vector<2x8xf32> to vector<2x8x1xf32>
    %127 = tpu.reciprocal %126 {approx = true} : vector<2x8x1xf32> -> vector<2x8x1xf32>
    %128 = vector.broadcast %127 : vector<2x8x1xf32> to vector<2x8x8xf32>
    %129 = arith.mulf %124, %128 : vector<2x8x8xf32>
    %130 = arith.truncf %129 : vector<2x8x8xf32> to vector<2x8x8xbf16>
    "tpu.trace_start"() <{level = 10 : i32, message = "bqk,bkd->bqd"}> : () -> ()
    %cst_36 = arith.constant dense<0.000000e+00> : vector<2x8x16xf32>
    %131 = tpu.matmul %130, %117, %cst_36 {dimension_numbers = #tpu.dot_dimension_numbers<[2], [1], [1], [2], [0, 0, 0, 1, 1, 2], [0], [0]>} : vector<2x8x8xbf16>, vector<2x8x16xbf16>, vector<2x8x16xf32> -> vector<2x8x16xf32>
    "tpu.trace_stop"() : () -> ()
    %132 = vector.extract_strided_slice %9 {offsets = [0, 0, 112], sizes = [2, 8, 16], strides = [1, 1, 1]} : vector<2x8x384xbf16> to vector<2x8x16xbf16>
    %133 = vector.extract_strided_slice %9 {offsets = [0, 0, 240], sizes = [2, 8, 16], strides = [1, 1, 1]} : vector<2x8x384xbf16> to vector<2x8x16xbf16>
    %134 = vector.extract_strided_slice %9 {offsets = [0, 0, 368], sizes = [2, 8, 16], strides = [1, 1, 1]} : vector<2x8x384xbf16> to vector<2x8x16xbf16>
    "tpu.trace_start"() <{level = 10 : i32, message = "bqd,bkd->bqk"}> : () -> ()
    %cst_37 = arith.constant dense<0.000000e+00> : vector<2x8x8xf32>
    %135 = tpu.matmul %132, %133, %cst_37 {dimension_numbers = #tpu.dot_dimension_numbers<[2], [2], [1], [1], [0, 0, 0, 1, 1, 1], [0], [0]>} : vector<2x8x16xbf16>, vector<2x8x16xbf16>, vector<2x8x8xf32> -> vector<2x8x8xf32>
    "tpu.trace_stop"() : () -> ()
    %136 = arith.addf %135, %12 : vector<2x8x8xf32>
    %cst_38 = arith.constant dense<0xFF800000> : vector<2x8xf32>
    %137 = vector.multi_reduction <maximumf>, %136, %cst_38 [2] : vector<2x8x8xf32> to vector<2x8xf32>
    %138 = vector.shape_cast %137 : vector<2x8xf32> to vector<2x8x1xf32>
    %139 = vector.broadcast %138 : vector<2x8x1xf32> to vector<2x8x8xf32>
    %140 = arith.subf %136, %139 : vector<2x8x8xf32>
    %141 = math.exp %140 : vector<2x8x8xf32>
    %cst_39 = arith.constant dense<0.000000e+00> : vector<2x8xf32>
    %142 = vector.multi_reduction <add>, %141, %cst_39 [2] : vector<2x8x8xf32> to vector<2x8xf32>
    %143 = vector.shape_cast %142 : vector<2x8xf32> to vector<2x8x1xf32>
    %144 = tpu.reciprocal %143 {approx = true} : vector<2x8x1xf32> -> vector<2x8x1xf32>
    %145 = vector.broadcast %144 : vector<2x8x1xf32> to vector<2x8x8xf32>
    %146 = arith.mulf %141, %145 : vector<2x8x8xf32>
    %147 = arith.truncf %146 : vector<2x8x8xf32> to vector<2x8x8xbf16>
    "tpu.trace_start"() <{level = 10 : i32, message = "bqk,bkd->bqd"}> : () -> ()
    %cst_40 = arith.constant dense<0.000000e+00> : vector<2x8x16xf32>
    %148 = tpu.matmul %147, %134, %cst_40 {dimension_numbers = #tpu.dot_dimension_numbers<[2], [1], [1], [2], [0, 0, 0, 1, 1, 2], [0], [0]>} : vector<2x8x8xbf16>, vector<2x8x16xbf16>, vector<2x8x16xf32> -> vector<2x8x16xf32>
    "tpu.trace_stop"() : () -> ()
    %149 = tpu.concatenate %29, %46, %63, %80, %97, %114, %131, %148 in 2 : vector<2x8x16xf32>, vector<2x8x16xf32>, vector<2x8x16xf32>, vector<2x8x16xf32>, vector<2x8x16xf32>, vector<2x8x16xf32>, vector<2x8x16xf32>, vector<2x8x16xf32> -> vector<2x8x128xf32>
    %150 = vector.shape_cast %149 : vector<2x8x128xf32> to vector<16x128xf32>
    %151 = arith.truncf %150 : vector<16x128xf32> to vector<16x128xbf16>
    %c0_41 = arith.constant 0 : index
    %c0_42 = arith.constant 0 : index
    %152 = vector.load %arg5[%c0_41, %c0_42] : memref<128x128xbf16, #tpu.memory_space<vmem>>, vector<128x128xbf16>
    %cst_43 = arith.constant dense<0.000000e+00> : vector<16x128xf32>
    %153 = tpu.matmul %151, %152, %cst_43 {dimension_numbers = #tpu.dot_dimension_numbers<[1], [0], [0], [1], [0, 0, 1, 1], [], []>} : vector<16x128xbf16>, vector<128x128xbf16>, vector<16x128xf32> -> vector<16x128xf32>
    %c0_44 = arith.constant 0 : index
    %c0_45 = arith.constant 0 : index
    %154 = vector.load %arg6[%c0_44, %c0_45] : memref<1x128xf32, #tpu.memory_space<vmem>>, vector<1x128xf32>
    %155 = vector.broadcast %154 : vector<1x128xf32> to vector<16x128xf32>
    %156 = arith.addf %153, %155 : vector<16x128xf32>
    %157 = arith.addf %156, %1 : vector<16x128xf32>
    %c0_46 = arith.constant 0 : index
    %c0_47 = arith.constant 0 : index
    %158 = vector.load %arg7[%c0_46, %c0_47] : memref<1x128xf32, #tpu.memory_space<vmem>>, vector<1x128xf32>
    %c0_48 = arith.constant 0 : index
    %c0_49 = arith.constant 0 : index
    %159 = vector.load %arg8[%c0_48, %c0_49] : memref<1x128xf32, #tpu.memory_space<vmem>>, vector<1x128xf32>
    %cst_50 = arith.constant dense<0.000000e+00> : vector<16xf32>
    %160 = vector.multi_reduction <add>, %157, %cst_50 [1] : vector<16x128xf32> to vector<16xf32>
    %161 = vector.shape_cast %160 : vector<16xf32> to vector<16x1xf32>
    %cst_51 = arith.constant 1.280000e+02 : f32
    %162 = vector.broadcast %cst_51 : f32 to vector<16x1xf32>
    %163 = arith.divf %161, %162 : vector<16x1xf32>
    %164 = vector.broadcast %163 : vector<16x1xf32> to vector<16x128xf32>
    %165 = arith.subf %157, %164 : vector<16x128xf32>
    %166 = arith.mulf %165, %165 : vector<16x128xf32>
    %cst_52 = arith.constant dense<0.000000e+00> : vector<16xf32>
    %167 = vector.multi_reduction <add>, %166, %cst_52 [1] : vector<16x128xf32> to vector<16xf32>
    %168 = vector.shape_cast %167 : vector<16xf32> to vector<16x1xf32>
    %cst_53 = arith.constant 1.280000e+02 : f32
    %169 = vector.broadcast %cst_53 : f32 to vector<16x1xf32>
    %170 = arith.divf %168, %169 : vector<16x1xf32>
    %171 = vector.broadcast %163 : vector<16x1xf32> to vector<16x128xf32>
    %172 = arith.subf %157, %171 : vector<16x128xf32>
    %cst_54 = arith.constant 9.99999974E-6 : f32
    %173 = vector.broadcast %cst_54 : f32 to vector<16x1xf32>
    %174 = arith.addf %170, %173 : vector<16x1xf32>
    %175 = math.rsqrt %174 : vector<16x1xf32>
    %176 = vector.broadcast %175 : vector<16x1xf32> to vector<16x128xf32>
    %177 = arith.mulf %172, %176 : vector<16x128xf32>
    %178 = vector.broadcast %158 : vector<1x128xf32> to vector<16x128xf32>
    %179 = arith.mulf %177, %178 : vector<16x128xf32>
    %180 = vector.broadcast %159 : vector<1x128xf32> to vector<16x128xf32>
    %181 = arith.addf %179, %180 : vector<16x128xf32>
    %182 = arith.truncf %181 : vector<16x128xf32> to vector<16x128xbf16>
    %c0_55 = arith.constant 0 : index
    %c0_56 = arith.constant 0 : index
    %183 = vector.load %arg9[%c0_55, %c0_56] : memref<128x128xbf16, #tpu.memory_space<vmem>>, vector<128x128xbf16>
    %cst_57 = arith.constant dense<0.000000e+00> : vector<16x128xf32>
    %184 = tpu.matmul %182, %183, %cst_57 {dimension_numbers = #tpu.dot_dimension_numbers<[1], [0], [0], [1], [0, 0, 1, 1], [], []>} : vector<16x128xbf16>, vector<128x128xbf16>, vector<16x128xf32> -> vector<16x128xf32>
    %c0_58 = arith.constant 0 : index
    %c0_59 = arith.constant 0 : index
    %185 = vector.load %arg10[%c0_58, %c0_59] : memref<1x128xf32, #tpu.memory_space<vmem>>, vector<1x128xf32>
    %186 = vector.broadcast %185 : vector<1x128xf32> to vector<16x128xf32>
    %187 = arith.addf %184, %186 : vector<16x128xf32>
    %cst_60 = arith.constant 5.000000e-01 : f32
    %188 = vector.broadcast %cst_60 : f32 to vector<16x128xf32>
    %189 = arith.mulf %188, %187 : vector<16x128xf32>
    %cst_61 = arith.constant 0.707106769 : f32
    %190 = vector.broadcast %cst_61 : f32 to vector<16x128xf32>
    %191 = arith.mulf %187, %190 : vector<16x128xf32>
    %192 = math.erf %191 : vector<16x128xf32>
    %cst_62 = arith.constant 1.000000e+00 : f32
    %193 = vector.broadcast %cst_62 : f32 to vector<16x128xf32>
    %194 = arith.addf %193, %192 : vector<16x128xf32>
    %195 = arith.mulf %189, %194 : vector<16x128xf32>
    %196 = arith.truncf %195 : vector<16x128xf32> to vector<16x128xbf16>
    %c0_63 = arith.constant 0 : index
    %c0_64 = arith.constant 0 : index
    %197 = vector.load %arg11[%c0_63, %c0_64] : memref<128x128xbf16, #tpu.memory_space<vmem>>, vector<128x128xbf16>
    %cst_65 = arith.constant dense<0.000000e+00> : vector<16x128xf32>
    %198 = tpu.matmul %196, %197, %cst_65 {dimension_numbers = #tpu.dot_dimension_numbers<[1], [0], [0], [1], [0, 0, 1, 1], [], []>} : vector<16x128xbf16>, vector<128x128xbf16>, vector<16x128xf32> -> vector<16x128xf32>
    %c0_66 = arith.constant 0 : index
    %c0_67 = arith.constant 0 : index
    %199 = vector.load %arg12[%c0_66, %c0_67] : memref<1x128xf32, #tpu.memory_space<vmem>>, vector<1x128xf32>
    %200 = vector.broadcast %199 : vector<1x128xf32> to vector<16x128xf32>
    %201 = arith.addf %198, %200 : vector<16x128xf32>
    %202 = arith.addf %181, %201 : vector<16x128xf32>
    %c0_68 = arith.constant 0 : index
    %c0_69 = arith.constant 0 : index
    %203 = vector.load %arg13[%c0_68, %c0_69] : memref<1x128xf32, #tpu.memory_space<vmem>>, vector<1x128xf32>
    %c0_70 = arith.constant 0 : index
    %c0_71 = arith.constant 0 : index
    %204 = vector.load %arg14[%c0_70, %c0_71] : memref<1x128xf32, #tpu.memory_space<vmem>>, vector<1x128xf32>
    %cst_72 = arith.constant dense<0.000000e+00> : vector<16xf32>
    %205 = vector.multi_reduction <add>, %202, %cst_72 [1] : vector<16x128xf32> to vector<16xf32>
    %206 = vector.shape_cast %205 : vector<16xf32> to vector<16x1xf32>
    %cst_73 = arith.constant 1.280000e+02 : f32
    %207 = vector.broadcast %cst_73 : f32 to vector<16x1xf32>
    %208 = arith.divf %206, %207 : vector<16x1xf32>
    %209 = vector.broadcast %208 : vector<16x1xf32> to vector<16x128xf32>
    %210 = arith.subf %202, %209 : vector<16x128xf32>
    %211 = arith.mulf %210, %210 : vector<16x128xf32>
    %cst_74 = arith.constant dense<0.000000e+00> : vector<16xf32>
    %212 = vector.multi_reduction <add>, %211, %cst_74 [1] : vector<16x128xf32> to vector<16xf32>
    %213 = vector.shape_cast %212 : vector<16xf32> to vector<16x1xf32>
    %cst_75 = arith.constant 1.280000e+02 : f32
    %214 = vector.broadcast %cst_75 : f32 to vector<16x1xf32>
    %215 = arith.divf %213, %214 : vector<16x1xf32>
    %216 = vector.broadcast %208 : vector<16x1xf32> to vector<16x128xf32>
    %217 = arith.subf %202, %216 : vector<16x128xf32>
    %cst_76 = arith.constant 9.99999974E-6 : f32
    %218 = vector.broadcast %cst_76 : f32 to vector<16x1xf32>
    %219 = arith.addf %215, %218 : vector<16x1xf32>
    %220 = math.rsqrt %219 : vector<16x1xf32>
    %221 = vector.broadcast %220 : vector<16x1xf32> to vector<16x128xf32>
    %222 = arith.mulf %217, %221 : vector<16x128xf32>
    %223 = vector.broadcast %203 : vector<1x128xf32> to vector<16x128xf32>
    %224 = arith.mulf %222, %223 : vector<16x128xf32>
    %225 = vector.broadcast %204 : vector<1x128xf32> to vector<16x128xf32>
    %226 = arith.addf %224, %225 : vector<16x128xf32>
    %227 = arith.addf %1, %226 : vector<16x128xf32>
    %228 = vector.shape_cast %227 : vector<16x128xf32> to vector<2x8x128xf32>
    %c0_77 = arith.constant 0 : index
    %c0_78 = arith.constant 0 : index
    %c0_79 = arith.constant 0 : index
    %229 = vector.load %arg15[%c0_77, %c0_78, %c0_79] : memref<2x8x128xf32, #tpu.memory_space<vmem>>, vector<2x8x128xf32>
    tpu.vector_store %arg15[%c0_77, %c0_78, %c0_79], %228 {strides = array<i32>} : memref<2x8x128xf32, #tpu.memory_space<vmem>>, vector<2x8x128xf32>,
    return
  }
  func.func @transform_0(%arg0: i32) -> (i32, i32, i32) {
    %c0_i32 = arith.constant 0 : i32
    %c0_i32_0 = arith.constant 0 : i32
    %c0_i32_1 = arith.constant 0 : i32
    return %arg0, %c0_i32, %c0_i32_0 : i32, i32, i32
  }
  func.func @transform_1(%arg0: i32) -> (i32, i32, i32) {
    %c0_i32 = arith.constant 0 : i32
    %c0_i32_0 = arith.constant 0 : i32
    %c0_i32_1 = arith.constant 0 : i32
    return %arg0, %c0_i32, %c0_i32_0 : i32, i32, i32
  }
  func.func @transform_2(%arg0: i32) -> (i32, i32) {
    %c0_i32 = arith.constant 0 : i32
    %c0_i32_0 = arith.constant 0 : i32
    %c0_i32_1 = arith.constant 0 : i32
    return %c0_i32, %c0_i32_0 : i32, i32
  }
  func.func @transform_3(%arg0: i32) -> (i32, i32) {
    %c0_i32 = arith.constant 0 : i32
    %c0_i32_0 = arith.constant 0 : i32
    %c0_i32_1 = arith.constant 0 : i32
    return %c0_i32, %c0_i32_0 : i32, i32
  }
  func.func @transform_4(%arg0: i32) -> (i32, i32) {
    %c0_i32 = arith.constant 0 : i32
    %c0_i32_0 = arith.constant 0 : i32
    %c0_i32_1 = arith.constant 0 : i32
    return %c0_i32, %c0_i32_0 : i32, i32
  }
  func.func @transform_5(%arg0: i32) -> (i32, i32) {
    %c0_i32 = arith.constant 0 : i32
    %c0_i32_0 = arith.constant 0 : i32
    %c0_i32_1 = arith.constant 0 : i32
    return %c0_i32, %c0_i32_0 : i32, i32
  }
  func.func @transform_6(%arg0: i32) -> (i32, i32) {
    %c0_i32 = arith.constant 0 : i32
    %c0_i32_0 = arith.constant 0 : i32
    %c0_i32_1 = arith.constant 0 : i32
    return %c0_i32, %c0_i32_0 : i32, i32
  }
  func.func @transform_7(%arg0: i32) -> (i32, i32) {
    %c0_i32 = arith.constant 0 : i32
    %c0_i32_0 = arith.constant 0 : i32
    %c0_i32_1 = arith.constant 0 : i32
    return %c0_i32, %c0_i32_0 : i32, i32
  }
  func.func @transform_8(%arg0: i32) -> (i32, i32) {
    %c0_i32 = arith.constant 0 : i32
    %c0_i32_0 = arith.constant 0 : i32
    %c0_i32_1 = arith.constant 0 : i32
    return %c0_i32, %c0_i32_0 : i32, i32
  }
  func.func @transform_9(%arg0: i32) -> (i32, i32) {
    %c0_i32 = arith.constant 0 : i32
    %c0_i32_0 = arith.constant 0 : i32
    %c0_i32_1 = arith.constant 0 : i32
    return %c0_i32, %c0_i32_0 : i32, i32
  }
  func.func @transform_10(%arg0: i32) -> (i32, i32) {
    %c0_i32 = arith.constant 0 : i32
    %c0_i32_0 = arith.constant 0 : i32
    %c0_i32_1 = arith.constant 0 : i32
    return %c0_i32, %c0_i32_0 : i32, i32
  }
  func.func @transform_11(%arg0: i32) -> (i32, i32) {
    %c0_i32 = arith.constant 0 : i32
    %c0_i32_0 = arith.constant 0 : i32
    %c0_i32_1 = arith.constant 0 : i32
    return %c0_i32, %c0_i32_0 : i32, i32
  }
  func.func @transform_12(%arg0: i32) -> (i32, i32) {
    %c0_i32 = arith.constant 0 : i32
    %c0_i32_0 = arith.constant 0 : i32
    %c0_i32_1 = arith.constant 0 : i32
    return %c0_i32, %c0_i32_0 : i32, i32
  }
  func.func @transform_13(%arg0: i32) -> (i32, i32) {
    %c0_i32 = arith.constant 0 : i32
    %c0_i32_0 = arith.constant 0 : i32
    %c0_i32_1 = arith.constant 0 : i32
    return %c0_i32, %c0_i32_0 : i32, i32
  }
  func.func @transform_14(%arg0: i32) -> (i32, i32, i32) {
    %c0_i32 = arith.constant 0 : i32
    %c0_i32_0 = arith.constant 0 : i32
    %c0_i32_1 = arith.constant 0 : i32
    return %arg0, %c0_i32, %c0_i32_0 : i32, i32, i32
  }
}

</mosaic_0001>

<bundles_post_ra>
// kernel: tpu_custom_call.1
= control target key start
LH: loop header
LB: loop body
LE: loop exit
PB: predicated region body
PF: predicated region fallthrough
CT: control target
= control target key end

     0   :  { %s4005_s0 = inlined_call_operand.hbm [shape: f32[4,8,128], index: 0, kind: input, shape index: {}]   ;;  %s4006_s1 = inlined_call_operand.hbm [shape: f32[4,1,8], index: 1, kind: input, shape index: {}]   ;;  %s4007_s2 = inlined_call_operand.hbm [shape: bf16[128,384], index: 2, kind: input, shape index: {}]   ;;  %s4008_s3 = inlined_call_operand.hbm [shape: f32[1,384], index: 3, kind: input, shape index: {}]   ;;  %s4009_s4 = inlined_call_operand.hbm [shape: bf16[128,128], index: 4, kind: input, shape index: {}]   ;;  %s4010_s5 = inlined_call_operand.vmem [shape: f32[1,128], index: 5, kind: input, shape index: {}]   ;;  %s4011_s6 = inlined_call_operand.vmem [shape: f32[1,128], index: 6, kind: input, shape index: {}]   ;;  %s4012_s7 = inlined_call_operand.vmem [shape: f32[1,128], index: 7, kind: input, shape index: {}]   ;;  %s4013_s8 = inlined_call_operand.hbm [shape: bf16[128,128], index: 8, kind: input, shape index: {}]   ;;  %s4014_s9 = inlined_call_operand.vmem [shape: f32[1,128], index: 9, kind: input, shape index: {}]   ;;  %s4015_s10 = inlined_call_operand.hbm [shape: bf16[128,128], index: 10, kind: input, shape index: {}]   ;;  %s4016_s11 = inlined_call_operand.vmem [shape: f32[1,128], index: 11, kind: input, shape index: {}]   ;;  %s4017_s12 = inlined_call_operand.vmem [shape: f32[1,128], index: 12, kind: input, shape index: {}]   ;;  %s4018_s13 = inlined_call_operand.vmem [shape: f32[1,128], index: 13, kind: input, shape index: {}]   ;;  %s4019_s14 = inlined_call_operand.hbm [shape: f32[4,8,128], index: 14, kind: output, shape index: {}]  }
   0x1   :  { %4026 = sst [smem:[#allocation26_spill]] %s4005_s0 }
   0x2   :  { %4027 = sst [smem:[#allocation27_spill]] %s4007_s2 }
   0x3   :  { %4028 = sst [smem:[#allocation28_spill]] %s4008_s3 }
   0x4   :  { %4029 = sst [smem:[#allocation29_spill]] %s4009_s4 }
   0x5   :  { %4030 = sst [smem:[#allocation30_spill]] %s4013_s8 }
   0x6   :  { %4031 = sst [smem:[#allocation31_spill]] %s4015_s10 }
   0x7   :  { %4032 = sst [smem:[#allocation32_spill]] %s4017_s12 }
   0x8   :  { %4033 = sst [smem:[#allocation33_spill]] %s4018_s13 }
   0x9   :  { %4034 = sst [smem:[#allocation34_spill]] %s4019_s14 }
   0xa   :  { %19 = vsyncpa [#allocation3], 0 }
   0xb   :  { %21 = vsyncpa [#allocation3 + $0x1], 0 }
   0xc   :  { %22 = vsyncpa [#allocation6], 0 }
   0xd   :  { %24 = vsyncpa [#allocation6 + $0x1], 0 }
   0xe   :  { %25 = vsyncpa [#allocation9], 0 }
   0xf   :  { %26 = vsyncpa [#allocation12], 0 }
  0x10   :  { %27 = vsyncpa [#allocation4], 0 }
  0x11   :  { %29 = vsyncpa [#allocation4 + $0x1], 0  ;;  %s3383_s29 = smov 0   ;;  %s3385_s30 = smov 0  }
  0x12   :  { %s3387_s15 = smov 0   ;;  %s3389_s16 = smov 0  }
  0x13 LB: > { %4035 = sst [smem:[#allocation21_spill]] %s3271_s29  ;;  %s3407_s20 = sadd.s32 4294967295, %s3283_s16   ;;  %s3283_s16 = sphi %s3389_s16, %s4059_s16   ;;  %s3279_s15 = sphi %s3387_s15, %s4061_s15   ;;  %s3275_s30 = sphi %s3385_s30, %s4063_s30   ;;  %s3271_s29 = sphi %s3383_s29, %s4062_s29  }
  0x14   : > { %4036 = sst [smem:[#allocation22_spill]] %s3279_s15  ;;  %p2445_p0 = scmp.ge.s32.totalorder %s3283_s16, 1 }
  0x15   : > { %s4037_s2 = sld [smem:[#allocation27_spill]]  ;;  %p56_p1 = scmp.eq.s32.totalorder %s3407_s20, 0 }
  0x16   : > { %p370_p2 = scmp.lt.s32.totalorder %s3283_s16, 3  ;;  %s3285_s22 = smov [#allocation7]  }
  0x17   : > { %s383_s23 = sshll.u32 %s3285_s22, 4  ;;  %s4039_s3 = sld [smem:[#allocation28_spill]]  ;;  %s384_s23 = int_to_ptr.vmem [resolvable:$true] %s383_s23 }
  0x18   : > { %p3412_p3 = pnand %p2445_p0, %p370_p2  ;;  %s3286_s28 = smov [#allocation8]  }
  0x19   : > { %s398_s17 = sshll.u32 %s3286_s28, 4  ;;  %s3287_s18 = smov 192   ;;  %s399_s17 = int_to_ptr.vmem [resolvable:$true] %s398_s17 }
  0x1a   : > { %p2773_p4 = pneg %p3412_p3  ;;  %s3288_s22 = smov 12  }
  0x1b   : > { %s381_s19 = sshll.u32 %s4037_s2, 4  ;;  %s4041_s8 = sld [smem:[#allocation30_spill]]  ;;  %s382_s19 = int_to_ptr.hbm [resolvable:$true] %s381_s19 }
  0x1c   : > { %p3424_p6 = pnand %p2773_p4, %p56_p1  ;;  %s4042_s4 = sld [smem:[#allocation29_spill]] }
  0x1d   : > { %s396_s26 = sshll.u32 %s4039_s3, 4  ;;  %s3289_s3 = smov [#allocation11]   ;;  %s397_s26 = int_to_ptr.hbm [resolvable:$true] %s396_s26 }
  0x1e   : > { %2776 = dma.hbm_to_vmem [thread:$0]  (!%p3424_p6), %s382_s19, 3072, %s384_s23, [#allocation6], %s3287_s18, %s3287_s18, %s3288_s22  }
  0x1f   : > { %2779 = dma.hbm_to_vmem [thread:$0]  (!%p3424_p6), %s397_s26, 48, %s399_s17, [#allocation9]  }
  0x20   : > { %s432_s14 = sshll.u32 %s3289_s3, 4  ;;  %s3290_s19 = smov 64   ;;  %s433_s14 = int_to_ptr.vmem [resolvable:$true] %s432_s14 }
  0x21   : > { %s430_s2 = sshll.u32 %s4041_s8, 4  ;;  %s3291_s23 = smov 4   ;;  %s431_s2 = int_to_ptr.hbm [resolvable:$true] %s430_s2 }
  0x22   : > { %s407_s28 = sshll.u32 %s4042_s4, 4  ;;  %s3292_s26 = smov [#allocation10]   ;;  %s408_s28 = int_to_ptr.hbm [resolvable:$true] %s407_s28 }
  0x23   : > { %2785 = dma.hbm_to_vmem [thread:$0]  (!%p3424_p6), %s431_s2, 1024, %s433_s14, [#allocation12], %s3290_s19, %s3290_s19, %s3291_s23  }
  0x24   : > { %s409_s3 = sshll.u32 %s3292_s26, 4  ;;  %s4043_s10 = sld [smem:[#allocation31_spill]]  ;;  %s410_s3 = int_to_ptr.vmem [resolvable:$true] %s409_s3 }
  0x25   : > { %2782 = dma.hbm_to_vmem [thread:$0]  (!%p3424_p6), %s408_s28, 1024, %s410_s3, [#allocation9], %s3290_s19, %s3290_s19, %s3291_s23  }
  0x26   : > { %s3293_s2 = smov [#allocation13]   ;;  %s2444_s14 = sadd.s32 4294967294, %s3283_s16  }
  0x27   : > { %s449_s13 = sshll.u32 %s3293_s2, 4  ;;  %s3449_s22 = sadd.s32 1, %s3283_s16   ;;  %s450_s13 = int_to_ptr.vmem [resolvable:$true] %s449_s13 }
  0x28   : > { %4044 = sst [smem:[#allocation23_spill]] %s3449_s22  ;;  %s42_s24 = sadd.s32 1, %s3279_s15 }
  0x29   : > { %s39_s25 = ssub.s32 %s3283_s16, %s3449_s22  ;;  %p49_p7 = scmp.ne.s32.totalorder %s3279_s15, %s3275_s30 }
  0x2a   : > { %s447_s12 = sshll.u32 %s4043_s10, 4  ;;  %p40_p8 = scmp.eq.s32.totalorder %s39_s25, 0  ;;  %s448_s12 = int_to_ptr.hbm [resolvable:$true] %s447_s12 }
  0x2b   : > { %2788 = dma.hbm_to_vmem [thread:$0]  (!%p3424_p6), %s448_s12, 1024, %s450_s13, [#allocation12], %s3290_s19, %s3290_s19, %s3291_s23  }
  0x2c   : > { %p50_p9 = scmp.eq.s32.totalorder %s3283_s16, 0  ;;  %p55_p10 = scmp.ne.s32.totalorder %s3275_s30, %s3271_s29 }
  0x2d   : > { %p357_p11 = scmp.eq.s32.totalorder %s3407_s20, 1  ;;  %p363_p2 = scmp.eq.s32.totalorder %s2444_s14, 1 }
  0x2e   : > { %s3461_s28 = scalar_select %p40_p8, %s3279_s15, %s42_s24  }
  0x2f   : > { %p3463_p12 = por %p50_p9, %p49_p7  ;;  %p3469_p13 = por %p56_p1, %p55_p10 }
  0x30   : > { %4045 = sst [smem:[#allocation24_spill]] %s3461_s28  ;;  %p3473_p0 = por %p357_p11, %p49_p7 }
  0x31   : > { %p2805_p4 = scmp.lt.s32.totalorder %s3283_s16, 2  ;;  %s3479_s23 = sand.u32 1, %s3279_s15  }
  0x32   : > { %p3481_p6 = por %p363_p2, %p55_p10  ;;  %s2452_s17 = sshll.u32 %s3479_s23, 4 }
  0x33   : > { %s2697_s18 = sshll.u32 %s3283_s16, 4  ;;  %s4051_s0 = sld [smem:[#allocation26_spill]] }
  0x34   : > { %s4049_s3 = scalar_select %p3481_p6, 1, 0 }
  0x35   : > { %s476_s25 = scalar_lea.vmem [#allocation2], %s2452_s17  ;;  %p3492_p7 = pnand %p2805_p4, %p3463_p12 }
  0x36   : > { %4050 = sst [smem:[#allocation25_spill]] %s4049_s3  ;;  %s484_s4 = sshll.u32 %s476_s25, 4  ;;  %s485_s4 = int_to_ptr.vmem [resolvable:$true] %s484_s4 }
  0x37   : > { %s494_s8 = sand.u32 1, %s3283_s16   ;;  %s473_s10 = scalar_lea.sflag [#allocation3], %s3479_s23 }
  0x38   : > { %p3145_p9 = pneg %p3492_p7 }
  0x39   : > { %s481_s13 = scalar_lea.hbm %s4051_s0, %s2697_s18  ;;  %s3148_s18 = scalar_lea.hbm %s4051_s0, 32 }
  0x3a   : > { %s482_s24 = sshll.u32 %s481_s13, 4  ;;  %s483_s24 = int_to_ptr.hbm [resolvable:$true] %s482_s24 }
  0x3b   : > { %s3141_s28 = sshra.s32 %s483_s24, 4  ;;  %s3142_s28 = int_to_ptr.hbm [resolvable:$true] %s3141_s28 }
  0x3c   : > { %s3143_s15 = scalar_lea.hbm %s3142_s28, 16  ;;  %p3149_p12 = scmp.lt.s32.totalorder %s3142_s28, %s4051_s0 }
  0x3d   : > { %p3144_p8 = scmp.ne.s32.totalorder %s3142_s28, %s3143_s15  ;;  %p3150_p2 = scmp.lt.s32.totalorder %s3148_s18, %s3143_s15 }
  0x3f   : > { %p3146_p10 = pnand %p3145_p9, %p3144_p8  ;;  %p3151_p4 = por %p3150_p2, %p3149_p12 }
  0x41   : > { %p3147_p11 = pneg %p3146_p10 }
  0x43   : > { %p3152_p5 = pnand %p3151_p4, %p3147_p11 }
  0x45   : > { %3155 = shalt.err (!%p3152_p5)
}
  0x46   : > { %s3294_s13 = smov 128   ;;  %s3295_s25 = smov 8  }
  0x47   : > { %2792 = dma.hbm_to_vmem [thread:$0]  (!%p3492_p7), %s483_s24, 256, %s485_s4, %s473_s10, %s3294_s13, %s3294_s13, %s3295_s25  }
  0x48   : > { %s2455_s22 = sshll.u32 %s3479_s23, 1  ;;  %s2456_s3 = sshll.u32 %s3283_s16, 1 }
  0x49   : > { %s502_s29 = scalar_lea.hbm %s4006_s1, %s2456_s3  ;;  %s498_s28 = scalar_lea.vmem [#allocation5], %s2455_s22 }
  0x4a   : > { %s503_s12 = sshll.u32 %s502_s29, 4  ;;  %s505_s15 = sshll.u32 %s498_s28, 4  ;;  %s504_s12 = int_to_ptr.hbm [resolvable:$true] %s503_s12  ;;  %s506_s15 = int_to_ptr.vmem [resolvable:$true] %s505_s15 }
  0x4b   : > { %s495_s18 = scalar_lea.sflag [#allocation6], %s494_s8  ;;  %s3171_s2 = sshra.s32 %s504_s12, 4  ;;  %s3172_s2 = int_to_ptr.hbm [resolvable:$true] %s3171_s2 }
  0x4c   : > { %s3173_s0 = scalar_lea.hbm %s3172_s2, 2  ;;  %s3178_s23 = scalar_lea.hbm %s4006_s1, 4 }
  0x4d   : > { %p3174_p5 = scmp.ne.s32.totalorder %s3172_s2, %s3173_s0  ;;  %p3179_p11 = scmp.lt.s32.totalorder %s3172_s2, %s4006_s1 }
  0x4e   : > { %p3180_p12 = scmp.lt.s32.totalorder %s3178_s23, %s3173_s0 }
  0x4f   : > { %p3176_p8 = pnand %p3174_p5, %p3145_p9 }
  0x50   : > { %p3181_p2 = por %p3180_p12, %p3179_p11 }
  0x51   : > { %p3177_p10 = pneg %p3176_p8 }
  0x53   : > { %p3182_p4 = pnand %p3181_p2, %p3177_p10 }
  0x55   : > { %3185 = shalt.err (!%p3182_p4)
}
  0x56   : > { %s3296_s8 = smov 16   ;;  %s3297_s29 = smov 1  }
  0x57   : > { %2795 = dma.hbm_to_vmem [thread:$0]  (!%p3492_p7), %s504_s12, 32, %s506_s15, %s495_s18, %s3296_s8, %s3296_s8, %s3297_s29  }
  0x58   : > { %517 = sbr.rel (%p3412_p3) target bundleno = 2191 (0x88f), region = 76  ;;  %s3530_s22 = sand.u32 (!%p3412_p3), 1, %s3275_s30  }
  0x59   : > { %s2458_s13 = sshll.u32 (!%p3412_p3), %s3530_s22, 4  ;;  %s520_s0 = scalar_lea.sflag (!%p3412_p3), [#allocation3], %s3530_s22 }
  0x5a   : > { %s3536_s25 = scalar_lea.vmem (!%p3412_p3), [#allocation2], %s2458_s13 }
  0x5d   : > { %3246 = dma.done.wait (%p3469_p13), %s520_s0, 256  }
  0x5e   : > { %3248 = vsyncadd (%p3469_p13), %s520_s0, 4294967040  ;;  %s529_s21 = sand.u32 1, %s3407_s20   ;;  %s2459_s14 = sshll.u32 %s3530_s22, 1 }
  0x5f   : > { %s530_s17 = scalar_lea.sflag [#allocation6], %s529_s21  ;;  %s3544_s26 = scalar_lea.vmem [#allocation5], %s2459_s14 }
  0x60   : > { %3250 = dma.done.wait (%p3469_p13), %s530_s17, 32  }
  0x61   : > { %3252 = vsyncadd (%p3469_p13), %s530_s17, 4294967264 }
  0x62   : > { %3254 = dma.done.wait (%p56_p1), [#allocation6], 3072  }
  0x63   : > { %3256 = vsyncadd (%p56_p1), [#allocation6], 4294964224 }
  0x64   : > { %3258 = dma.done.wait (%p56_p1), [#allocation9], 1072  }
  0x65   : > { %3260 = vsyncadd (%p56_p1), [#allocation9], 4294966224 }
  0x66   : > { %3262 = dma.done.wait (%p56_p1), [#allocation12], 2048  }
  0x67   : > { %3264 = vsyncadd (%p56_p1), [#allocation12], 4294965248  ;;  %v2552_v0 = vld [vmem:[#allocation7 + $0xa8] sm:$0xf]  ;;  %v2720_v1 = vld [vmem:[#allocation7 + $0xb0] sm:$0xf0] }
  0x68   : > { %v2719_v2 = vld [vmem:[#allocation7 + $0xac] sm:$0xf]  ;;  %v2553_v3 = vor.u32 %v2720_v1, %v2552_v0  ;;  %v2554_v4 = vld [vmem:[#allocation7 + $0xb4] sm:$0xf0]  ;;  %v2540_v5 = vld [vmem:[#allocation7 + $0x90] sm:$0xf] }
  0x69   : > { %v2717_v6 = vld [vmem:[#allocation7 + $0x98] sm:$0xf0]  ;;  %v2557_v7 = vor.u32 %v2719_v2, %v2554_v4  ;;  %v2716_v8 = vld [vmem:[#allocation7 + $0x94] sm:$0xf]  ;;  %v2542_v9 = vld [vmem:[#allocation7 + $0x9c] sm:$0xf0] }
  0x6a   : > { %784 = vmatpush.bf16.msra.mxu0 %v2553_v3  ;;  %v2541_v10 = vor.u32 %v2717_v6, %v2540_v5  ;;  %v2545_v11 = vor.u32 %v2716_v8, %v2542_v9  ;;  %v2528_v12 = vld [vmem:[#allocation7 + $0x78] sm:$0xf]  ;;  %v2714_v13 = vld [vmem:[#allocation7 + $0x80] sm:$0xf0]  ;;  %v2713_v14 = vld [vmem:[#allocation7 + $0x7c] sm:$0xf] }
  0x6b   : > { %798 = vmatpush.bf16.msra.mxu1 %v2557_v7  ;;  %v2530_v15 = vld [vmem:[#allocation7 + $0x84] sm:$0xf0]  ;;  %v2529_v16 = vor.u32 %v2714_v13, %v2528_v12  ;;  %v2516_v18 = vld [vmem:[#allocation7 + $0x60] sm:$0xf]  ;;  %v2711_v19 = vld [vmem:[#allocation7 + $0x68] sm:$0xf0] }
  0x6c   : > { %v2533_v17 = vor.u32 %v2713_v14, %v2530_v15  ;;  %v2710_v20 = vld [vmem:[#allocation7 + $0x64] sm:$0xf]  ;;  %v2518_v21 = vld [vmem:[#allocation7 + $0x6c] sm:$0xf0]  ;;  %v2517_v22 = vor.u32 %v2711_v19, %v2516_v18  ;;  %v2504_v23 = vld [vmem:[#allocation7 + $0x48] sm:$0xf] }
  0x6d   : > { %v2560_v24 = vld [vmem:[#allocation7 + $0xb0] sm:$0xf]  ;;  %v2721_v25 = vld [vmem:[#allocation7 + $0xb8] sm:$0xf0]  ;;  %v2521_v26 = vor.u32 %v2710_v20, %v2518_v21  ;;  %v2708_v27 = vld [vmem:[#allocation7 + $0x50] sm:$0xf0] }
  0x6e   : > { %785 = vmatpush.bf16.msra.mxu0 %v2541_v10  ;;  %v2561_v28 = vor.u32 %v2721_v25, %v2560_v24  ;;  %v2548_v29 = vld [vmem:[#allocation7 + $0x98] sm:$0xf]  ;;  %v2718_v30 = vld [vmem:[#allocation7 + $0xa0] sm:$0xf0]  ;;  %v2707_v31 = vld [vmem:[#allocation7 + $0x4c] sm:$0xf]  ;;  %v2505_v34 = vor.u32 %v2708_v27, %v2504_v23 }
  0x6f   : > { %799 = vmatpush.bf16.msra.mxu1 %v2545_v11  ;;  %v2506_v32 = vld [vmem:[#allocation7 + $0x54] sm:$0xf0]  ;;  %v2549_v33 = vor.u32 %v2718_v30, %v2548_v29  ;;  %v2492_v35 = vld [vmem:[#allocation7 + $0x30] sm:$0xf]  ;;  %v2536_v36 = vld [vmem:[#allocation7 + $0x80] sm:$0xf] }
  0x70   : > { %812 = vmatpush.bf16.msra.mxu2 %v2561_v28  ;;  %v2715_v37 = vld [vmem:[#allocation7 + $0x88] sm:$0xf0]  ;;  %v2509_v38 = vor.u32 %v2707_v31, %v2506_v32  ;;  %v2705_v39 = vld [vmem:[#allocation7 + $0x38] sm:$0xf0]  ;;  %v2704_v40 = vld [vmem:[#allocation7 + $0x34] sm:$0xf] }
  0x71   : > { %v2494_v41 = vld [vmem:[#allocation7 + $0x3c] sm:$0xf0]  ;;  %v2524_v42 = vld [vmem:[#allocation7 + $0x68] sm:$0xf]  ;;  %v2712_v43 = vld [vmem:[#allocation7 + $0x70] sm:$0xf0]  ;;  %v2537_v44 = vor.u32 %v2715_v37, %v2536_v36  ;;  %v2493_v45 = vor.u32 %v2705_v39, %v2492_v35 }
  0x72   : > { %786 = vmatpush.bf16.msra.mxu0 %v2529_v16  ;;  %v2497_v46 = vor.u32 %v2704_v40, %v2494_v41  ;;  %v2480_v47 = vld [vmem:[#allocation7 + $0x18] sm:$0xf]  ;;  %v2702_v48 = vld [vmem:[#allocation7 + $0x20] sm:$0xf0]  ;;  %v2701_v49 = vld [vmem:[#allocation7 + $0x1c] sm:$0xf]  ;;  %v2525_v51 = vor.u32 %v2712_v43, %v2524_v42 }
  0x73   : > { %800 = vmatpush.bf16.msra.mxu1 %v2533_v17  ;;  %v2482_v50 = vld [vmem:[#allocation7 + $0x24] sm:$0xf0]  ;;  %v2481_v52 = vor.u32 %v2702_v48, %v2480_v47  ;;  %v2512_v53 = vld [vmem:[#allocation7 + $0x50] sm:$0xf]  ;;  %v2709_v54 = vld [vmem:[#allocation7 + $0x58] sm:$0xf0] }
  0x74   : > { %813 = vmatpush.bf16.msra.mxu2 %v2549_v33  ;;  %v2485_v55 = vor.u32 %v2701_v49, %v2482_v50  ;;  %v2468_v56 = vld [vmem:[#allocation7] sm:$0xf]  ;;  %v2699_v57 = vld [vmem:[#allocation7 + $0x8] sm:$0xf0]  ;;  %v2698_v58 = vld [vmem:[#allocation7 + $0x4] sm:$0xf]  ;;  %v2513_v61 = vor.u32 %v2709_v54, %v2512_v53 }
  0x75   : > { %v2470_v59 = vld [vmem:[#allocation7 + $0xc] sm:$0xf0]  ;;  %v2469_v62 = vor.u32 %v2699_v57, %v2468_v56  ;;  %v614_v63 = vld [vmem:[%s3536_s25 + $0x8] sm:$0xff]  ;;  %v2488_v5 = vld [vmem:[#allocation7 + $0x20] sm:$0xf]  ;;  %vm840_vm0 = vcmask 130048  }
  0x76   : > { %787 = vmatpush.bf16.msra.mxu0 %v2517_v22  ;;  %v613_v60 = vld [vmem:[%s3536_s25] sm:$0xff]  ;;  %v2500_v0 = vld [vmem:[#allocation7 + $0x38] sm:$0xf]  ;;  %v2706_v1 = vld [vmem:[#allocation7 + $0x40] sm:$0xf0]  ;;  %v2473_v2 = vor.u32 %v2698_v58, %v2470_v59  ;;  %s3298_s27 = smov 96  }
  0x77   : > { %801 = vmatpush.bf16.msra.mxu1 %v2521_v26  ;;  %v615_v3 = vpack.c.bf16 %v614_v63, %v613_v60  ;;  %v2501_v4 = vor.u32 %v2706_v1, %v2500_v0  ;;  %v2703_v6 = vld [vmem:[#allocation7 + $0x28] sm:$0xf0]  ;;  %v2476_v8 = vld [vmem:[#allocation7 + $0x8] sm:$0xf]  ;;  %v2700_v9 = vld [vmem:[#allocation7 + $0x10] sm:$0xf0] }
  0x78   : > { %814 = vmatpush.bf16.msra.mxu2 %v2537_v44  ;;  %v2489_v7 = vor.u32 %v2703_v6, %v2488_v5  ;;  %v2477_v10 = vor.u32 %v2700_v9, %v2476_v8  ;;  %v648_v11 = vld [vmem:[#allocation8] sm:$0x7]  ;;  %s3299_s12 = smov 112   ;;  %s3300_s28 = smov 80   ;;  %vm909_vm1 = vcmask 1043456   ;;  %vm881_vm2 = vcmask 64512  }
  0x79   : > { %v650_v12 = vperm.slane %v648_v11, 0  ;;  %v651_v13 = vperm.slane %v648_v11, 1  ;;  %s3301_s15 = smov 64   ;;  %s3302_s18 = smov 48   ;;  %v652_v33 = vperm.slane %v648_v11, 2  ;;  %vm1811_vm3 = vcmask 261120  }
  0x7a   : > { %788 = vmatpush.bf16.msra.mxu0 %v2505_v34  ;;  %s3303_s2 = smov 32   ;;  %s3304_s4 = smov 16   ;;  %vm1814_vm4 = vcmask 392192   ;;  %vm1817_vm5 = vcmask 523264   ;;  %vm1820_vm6 = vcmask 654336   ;;  %vm1823_vm7 = vcmask 785408  }
  0x7b   : > { %802 = vmatpush.bf16.msra.mxu1 %v2509_v38  ;;  %vm1826_vm8 = vcmask 916480   ;;  %s4055_s10 = sld [smem:[#allocation34_spill]]  ;;  %s608_s24 = scalar_lea.vmem [#allocation14], %s2458_s13 }
  0x7c   : > { %815 = vmatpush.bf16.msra.mxu2 %v2525_v51  ;;  %s2298_s3 = sshll.u32 %s608_s24, 4  ;;  %s2299_s3 = int_to_ptr.vmem [resolvable:$true] %s2298_s3 }
  0x7e   : > { %789 = vmatpush.bf16.msra.mxu0 %v2493_v45 }
  0x7f   : > { %803 = vmatpush.bf16.msra.mxu1 %v2497_v46 }
  0x80   : > { %816 = vmatpush.bf16.msra.mxu2 %v2513_v61 }
  0x81   : > { %s3221_s21 = scalar_lea.hbm %s4055_s10, 32 }
  0x82   : > { %790 = vmatpush.bf16.msra.mxu0 %v2481_v52 }
  0x83   : > { %804 = vmatpush.bf16.msra.mxu1 %v2485_v55 }
  0x84   : > { %817 = vmatpush.bf16.msra.mxu2 %v2501_v4 }
  0x86   : > { %791 = vmatpush.bf16.msra.mxu0 %v2469_v62 }
  0x87   : > { %805 = vmatpush.bf16.msra.mxu1 %v2473_v2  ;;  %v3619_v2 = vld [vmem:[%s3544_s26] ss:$0 sm:$0xff] }
  0x88   : > { %818 = vmatpush.bf16.msra.mxu2 %v2489_v7 }
  0x89   : > { %792 = vmatmul.bf16.vlgmr.msra.gmra.mxu0 %v615_v3 }
  0x8a   : > { %806 = vmatmul.bf16.vlgmr.msra.gmra.mxu1 %v615_v3 }
  0x8c   : > { %819 = vmatpush.bf16.msra.mxu2 %v2477_v10 }
  0x8f   : > { %820 = vmatmul.bf16.vlgmr.msra.gmra.mxu2 %v615_v3 }
 0x106   : > { %v793_v14 = vpop.f32.mrf.mxu0 }
 0x107   : > { %v794_v15 = vadd.f32 %v793_v14, %v650_v12  ;;  %v807_v16 = vpop.f32.mrf.mxu1 }
 0x108   : > { %v808_v17 = vadd.f32 %v807_v16, %v651_v13 }
 0x10a   : > { %v826_v18 = vpack.c.bf16 %v808_v17, %v794_v15  ;;  %v3630_v15 = vld [vmem:[%s3544_s26 + $0x1] ss:$0 sm:$0xff] }
 0x10c   : > { %1069 = vrot.lane.b32.xlu2 %v826_v18, %s3298_s27  ;;  %945 = vrot.lane.b32.xlu0 %v826_v18, %s3299_s12  ;;  %v839_v19 = vrot.slane %v826_v18, 4  ;;  %v948_v20 = vunpack.c.l.b16 %v826_v18 }
 0x10e   : > { %v795_v21 = vpop.f32.mrf.mxu0  ;;  %v845_v22 = vsel %vm840_vm0, %v839_v19, 0  ;;  %v949_v23 = vpack.c.b16 %v948_v20, %v948_v20 }
 0x10f   : > { %v796_v24 = vadd.f32 %v795_v21, %v650_v12  ;;  %v809_v25 = vpop.f32.mrf.mxu1  ;;  %854 = vmatpush.bf16.xpose.msrb.mxu0 %v845_v22 }
 0x110   : > { %v810_v26 = vadd.f32 %v809_v25, %v651_v13  ;;  %950 = vrot.lane.b32.xlu1 %v949_v23, %s3299_s12 }
 0x112   : > { %v828_v27 = vpack.c.bf16 %v810_v26, %v796_v24  ;;  %v821_v32 = vpop.f32.mrf.mxu2 }
 0x113   : > { %v822_v34 = vadd.f32 %v821_v32, %v652_v33 }
 0x114   : > { %1093 = vrot.lane.b32.xlu2 %v828_v27, %s3298_s27  ;;  %971 = vrot.lane.b32.xlu0 %v828_v27, %s3299_s12  ;;  %v861_v28 = vrot.slane %v828_v27, 4  ;;  %v974_v30 = vunpack.c.l.b16 %v828_v27 }
 0x115   : > { %v827_v38 = vpack.c.bf16 %v822_v34, %v822_v34 }
 0x116   : > { %2562 = vmatmul.msk.bf16.vlgmr.msrb.gmra.mxu0 %vm840_vm0, %v826_v18  ;;  %v866_v29 = vsel %vm840_vm0, %v861_v28, 0  ;;  %v975_v31 = vpack.c.b16 %v974_v30, %v974_v30 }
 0x117   : > { %875 = vmatpush.bf16.xpose.msra.mxu3 %v866_v29  ;;  %v1022_v40 = vunpack.c.l.b16 %v827_v38  ;;  %v911_v45 = vsel %vm909_vm1, %v827_v38, 0 }
 0x118   : > { %1186 = vrot.lane.b32.xlu1 %v949_v23, %s3300_s28 }
 0x119   : > { %v3592_v41 = vpack.c.b16 %v1022_v40, %v1022_v40 }
 0x11a   : > { %v823_v35 = vpop.f32.mrf.mxu2 }
 0x11b   : > { %v824_v36 = vadd.f32 %v823_v35, %v652_v33 }
 0x11c   : > { %1183 = vrot.lane.b32.xlu2 %v826_v18, %s3300_s28  ;;  %1072 = vrot.lane.b32.xlu0 %v949_v23, %s3298_s27 }
 0x11d   : > { %v829_v37 = vpack.c.bf16 %v824_v36, %v824_v36 }
 0x11e   : > { %2563 = vmatmul.msk.bf16.vlgmr.msra.gmra.mxu3 %vm840_vm0, %v828_v27 }
 0x11f   : > { %v930_v39 = vsel %vm909_vm1, %v829_v37, 0  ;;  %v1046_v42 = vunpack.c.l.b16 %v829_v37  ;;  %920 = vmatpush.bf16.msrb.mxu3 %v911_v45 }
 0x120   : > { %1321 = vrot.lane.b32.xlu1 %v828_v27, %s3301_s15  ;;  %939 = vmatpush.bf16.msra.mxu0 %v930_v39 }
 0x121   : > { %v3602_v43 = vpack.c.b16 %v1046_v42, %v1046_v42 }
 0x124   : > { %1210 = vrot.lane.b32.xlu2 %v975_v31, %s3300_s28  ;;  %1207 = vrot.lane.b32.xlu0 %v828_v27, %s3300_s28 }
 0x128   : > { %976 = vrot.lane.b32.xlu1 %v975_v31, %s3299_s12 }
 0x12c   : > { %1300 = vrot.lane.b32.xlu2 %v949_v23, %s3301_s15  ;;  %1297 = vrot.lane.b32.xlu0 %v826_v18, %s3301_s15 }
 0x130   : > { %1096 = vrot.lane.b32.xlu1 %v975_v31, %s3298_s27 }
 0x134   : > { %1435 = vrot.lane.b32.xlu2 %v828_v27, %s3302_s18  ;;  %1324 = vrot.lane.b32.xlu0 %v975_v31, %s3301_s15 }
 0x138   : > { %1411 = vrot.lane.b32.xlu1 %v826_v18, %s3302_s18 }
 0x13c   : > { %1525 = vrot.lane.b32.xlu2 %v826_v18, %s3303_s2  ;;  %1414 = vrot.lane.b32.xlu0 %v949_v23, %s3302_s18 }
 0x140   : > { %1528 = vrot.lane.b32.xlu1 %v949_v23, %s3303_s2 }
 0x144   : > { %1642 = vrot.lane.b32.xlu2 %v949_v23, %s3304_s4  ;;  %1549 = vrot.lane.b32.xlu0 %v828_v27, %s3303_s2 }
 0x148   : > { %1663 = vrot.lane.b32.xlu1 %v828_v27, %s3304_s4 }
 0x14c   : > { %1024 = vrot.lane.b32.xlu2 %v3592_v41, %s3299_s12  ;;  %1639 = vrot.lane.b32.xlu0 %v826_v18, %s3304_s4 }
 0x150   : > { %1438 = vrot.lane.b32.xlu1 %v975_v31, %s3302_s18 }
 0x154   : > { %1552 = vrot.lane.b32.xlu2 %v975_v31, %s3303_s2  ;;  %1141 = vrot.lane.b32.xlu0 %v3592_v41, %s3298_s27 }
 0x158   : > { %1048 = vrot.lane.b32.xlu1 %v3602_v43, %s3299_s12 }
 0x15c   : > { %1666 = vrot.lane.b32.xlu0 %v975_v31, %s3304_s4 }
 0x164   : > { %1162 = vrot.lane.b32.xlu0 %v3602_v43, %s3298_s27 }
 0x166   : > { %v1070_v44 = vpop.permute.xlu2 %1069 }
 0x167   : > { %v1071_v48 = vrot.slane %v1070_v44, 4 }
 0x169   : > { %v1078_v53 = vsel %vm840_vm0, %v1071_v48, 0 }
 0x16e   : > { %v1094_v46 = vpop.permute.xlu2 %1093 }
 0x16f   : > { %v1095_v56 = vrot.slane %v1094_v46, 4 }
 0x171   : > { %v1102_v62 = vsel %vm840_vm0, %v1095_v56, 0 }
 0x176   : > { %v1184_v47 = vpop.permute.xlu2 %1183 }
 0x177   : > { %v1185_v55 = vrot.slane %v1184_v47, 4 }
 0x179   : > { %v1192_v60 = vsel %vm840_vm0, %v1185_v55, 0 }
 0x17e   : > { %v3610_v49 = vpop.permute.xlu2 %1210  ;;  %v946_v50 = vpop.permute.xlu0 %945 }
 0x17f   : > { %v947_v51 = vrot.slane %v946_v50, 4 }
 0x181   : > { %v956_v52 = vsel %vm840_vm0, %v947_v51, 0 }
 0x182   : > { %965 = vmatpush.bf16.xpose.msrb.mxu1 %v956_v52  ;;  %v951_v54 = vpop.permute.xlu1 %950 }
 0x186   : > { %v972_v57 = vpop.permute.xlu0 %971  ;;  %v1301_v58 = vpop.permute.xlu2 %1300 }
 0x187   : > { %v973_v59 = vrot.slane %v972_v57, 4 }
 0x189   : > { %2566 = vmatmul.msk.bf16.vlgmr.msrb.gmra.mxu1 %vm840_vm0, %v951_v54  ;;  %v982_v61 = vsel %vm840_vm0, %v973_v59, 0 }
 0x18a   : > { %1087 = vmatpush.bf16.xpose.msra.mxu1 %v1078_v53  ;;  %991 = vmatpush.bf16.xpose.msrb.mxu2 %v982_v61  ;;  %v1187_v63 = vpop.permute.xlu1 %1186 }
 0x18e   : > { %v1436_v0 = vpop.permute.xlu2 %1435  ;;  %v1073_v1 = vpop.permute.xlu0 %1072 }
 0x18f   : > { %v1437_v33 = vrot.slane %v1436_v0, 4 }
 0x191   : > { %v1444_v36 = vsel %vm840_vm0, %v1437_v33, 0 }
 0x192   : > { %1201 = vmatpush.bf16.xpose.msrb.mxu1 %v1192_v60  ;;  %1111 = vmatpush.bf16.xpose.msra.mxu2 %v1102_v62  ;;  %v1322_v3 = vpop.permute.xlu1 %1321 }
 0x193   : > { %v856_v4 = vpop.f32.mrf.mxu0  ;;  %v1323_v24 = vrot.slane %v1322_v3, 4 }
 0x194   : > { %v3622_v5 = vadd.f32 %v3619_v2, %v856_v4 }
 0x195   : > { %v1330_v28 = vsel %vm840_vm0, %v1323_v24, 0 }
 0x196   : > { %v1526_v6 = vpop.permute.xlu2 %1525  ;;  %v1208_v7 = vpop.permute.xlu0 %1207  ;;  %v882_v8 = vsel %vm881_vm2, %v3622_v5, -inf }
 0x197   : > { %v1209_v9 = vrot.slane %v1208_v7, 4  ;;  %883 = vmax.xlane.f32.xlu1 %v882_v8  ;;  %v1527_v32 = vrot.slane %v1526_v6, 4 }
 0x199   : > { %v1216_v10 = vsel %vm840_vm0, %v1209_v9, 0  ;;  %2570 = vmatmul.msk.bf16.vlgmr.msra.gmra.mxu1 %vm840_vm0, %v1073_v1  ;;  %v1534_v35 = vsel %vm840_vm0, %v1527_v32, 0 }
 0x19a   : > { %v977_v11 = vpop.permute.xlu1 %976 }
 0x19b   : > { %v858_v12 = vpop.f32.mrf.mxu0  ;;  %2567 = vmatmul.msk.bf16.vlgmr.msrb.gmra.mxu2 %vm840_vm0, %v977_v11 }
 0x19c   : > { %1225 = vmatpush.bf16.xpose.msrb.mxu2 %v1216_v10 }
 0x19e   : > { %v1643_v13 = vpop.permute.xlu2 %1642  ;;  %v1298_v14 = vpop.permute.xlu0 %1297 }
 0x19f   : > { %v1299_v16 = vrot.slane %v1298_v14, 4 }
 0x1a1   : > { %v1306_v17 = vsel %vm840_vm0, %v1299_v16, 0  ;;  %v877_v18 = vpop.f32.mrf.mxu3 }
 0x1a2   : > { %v3634_v19 = vadd.f32 %v3630_v15, %v877_v18  ;;  %1315 = vmatpush.bf16.xpose.msra.mxu1 %v1306_v17  ;;  %v1097_v20 = vpop.permute.xlu1 %1096 }
 0x1a4   : > { %v885_v21 = vsel %vm881_vm2, %v3634_v19, -inf }
 0x1a5   : > { %886 = vmax.xlane.f32.xlu2 %v885_v21 }
 0x1a6   : > { %v1025_v22 = vpop.permute.xlu2 %1024  ;;  %v1325_v23 = vpop.permute.xlu0 %1324 }
 0x1a7   : > { %v1030_v25 = vsel %vm909_vm1, %v1025_v22, 0 }
 0x1a8   : > { %1039 = vmatpush.bf16.msra.mxu3 %v1030_v25 }
 0x1a9   : > { %v879_v26 = vpop.f32.mrf.mxu3  ;;  %2574 = vmatmul.msk.bf16.vlgmr.msrb.gmra.mxu1 %vm840_vm0, %v1187_v63 }
 0x1aa   : > { %v1412_v27 = vpop.permute.xlu1 %1411 }
 0x1ab   : > { %v1413_v29 = vrot.slane %v1412_v27, 4  ;;  %2571 = vmatmul.msk.bf16.vlgmr.msra.gmra.mxu2 %vm840_vm0, %v1097_v20 }
 0x1ac   : > { %1339 = vmatpush.bf16.xpose.msra.mxu2 %v1330_v28 }
 0x1ad   : > { %v1420_v30 = vsel %vm840_vm0, %v1413_v29, 0 }
 0x1ae   : > { %v1415_v31 = vpop.permute.xlu0 %1414  ;;  %1429 = vmatpush.bf16.xpose.msrb.mxu1 %v1420_v30  ;;  %v1553_v51 = vpop.permute.xlu2 %1552 }
 0x1b0   : > { %1276 = vrot.lane.b32.xlu1 %v3602_v43, %s3300_s28 }
 0x1b2   : > { %v1529_v37 = vpop.permute.xlu1 %1528 }
 0x1b6   : > { %v1550_v34 = vpop.permute.xlu0 %1549 }
 0x1b7   : > { %v1551_v40 = vrot.slane %v1550_v34, 4 }
 0x1b8   : > { %1369 = vrot.lane.b32.xlu1 %v3592_v41, %s3301_s15 }
 0x1b9   : > { %2578 = vmatmul.msk.bf16.vlgmr.msra.gmra.mxu1 %vm840_vm0, %v1301_v58  ;;  %v1558_v45 = vsel %vm840_vm0, %v1551_v40, 0 }
 0x1ba   : > { %1543 = vmatpush.bf16.xpose.msra.mxu1 %v1534_v35  ;;  %v1664_v42 = vpop.permute.xlu1 %1663 }
 0x1bb   : > { %2575 = vmatmul.msk.bf16.vlgmr.msrb.gmra.mxu2 %vm840_vm0, %v3610_v49  ;;  %v1665_v47 = vrot.slane %v1664_v42, 4 }
 0x1bc   : > { %1453 = vmatpush.bf16.xpose.msrb.mxu2 %v1444_v36 }
 0x1bd   : > { %1255 = vrot.lane.b32.xlu2 %v3592_v41, %s3300_s28  ;;  %v1672_v48 = vsel %vm840_vm0, %v1665_v47, 0 }
 0x1be   : > { %v1640_v38 = vpop.permute.xlu0 %1639 }
 0x1bf   : > { %v1641_v39 = vrot.slane %v1640_v38, 4 }
 0x1c1   : > { %v1648_v44 = vsel %vm840_vm0, %v1641_v39, 0 }
 0x1c2   : > { %v1439_v46 = vpop.permute.xlu1 %1438 }
 0x1c6   : > { %v3664_v52 = vpop.permute.xlu0 %1141 }
 0x1c9   : > { %2582 = vmatmul.msk.bf16.vlgmr.msrb.gmra.mxu1 %vm840_vm0, %v1415_v31 }
 0x1ca   : > { %1657 = vmatpush.bf16.xpose.msrb.mxu1 %v1648_v44  ;;  %v1049_v49 = vpop.permute.xlu1 %1048 }
 0x1cb   : > { %2579 = vmatmul.msk.bf16.vlgmr.msra.gmra.mxu2 %vm840_vm0, %v1325_v23  ;;  %v1054_v50 = vsel %vm909_vm1, %v1049_v49, 0 }
 0x1cc   : > { %1567 = vmatpush.bf16.xpose.msra.mxu2 %v1558_v45  ;;  %1063 = vmatpush.bf16.msrb.mxu0 %v1054_v50 }
 0x1ce   : > { %v1667_v53 = vpop.permute.xlu0 %1666 }
 0x1d9   : > { %2586 = vmatmul.msk.bf16.vlgmr.msra.gmra.mxu1 %vm840_vm0, %v1529_v37 }
 0x1db   : > { %2583 = vmatmul.msk.bf16.vlgmr.msrb.gmra.mxu2 %vm840_vm0, %v1439_v46 }
 0x1dc   : > { %1681 = vmatpush.bf16.xpose.msrb.mxu2 %v1672_v48 }
 0x1e9   : > { %2590 = vmatmul.msk.bf16.vlgmr.msrb.gmra.mxu1 %vm840_vm0, %v1643_v13 }
 0x1eb   : > { %2587 = vmatmul.msk.bf16.vlgmr.msra.gmra.mxu2 %vm840_vm0, %v1553_v51 }
 0x1fb   : > { %2591 = vmatmul.msk.bf16.vlgmr.msrb.gmra.mxu2 %vm840_vm0, %v1667_v53 }
 0x206   : > { %v967_v54 = vpop.f32.mrf.mxu1 }
 0x207   : > { %v3668_v55 = vadd.f32 %v3619_v2, %v967_v54 }
 0x209   : > { %v997_v56 = vsel %vm881_vm2, %v3668_v55, -inf }
 0x20a   : > { %998 = vmax.xlane.f32.xlu0 %v997_v56  ;;  %v884_v57 = vpop.xlane.xlu1 %883 }
 0x20b   : > { %v888_v58 = vsub.f32 %v3622_v5, %v884_v57  ;;  %v1163_v57 = vpop.permute.xlu0 %1162 }
 0x20d   : > { %v890_v59 = vmul.f32 1.442695, %v888_v58 }
 0x20e   : > { %v969_v60 = vpop.f32.mrf.mxu1 }
 0x20f   : > { %2911 = vpow2.f32 %v890_v59 }
 0x215   : > { %v3673_v61 = vpop.eup %2911 }
 0x216   : > { %v1089_v62 = vpop.f32.mrf.mxu1  ;;  %v894_v63 = vsel %vm881_vm2, %v3673_v61, 0.0 }
 0x217   : > { %895 = vadd.xlane.f32.xlu1 %v894_v63  ;;  %v3678_v0 = vadd.f32 %v3619_v2, %v1089_v62 }
 0x218   : > { %v887_v13 = vpop.xlane.xlu2 %886 }
 0x219   : > { %v1117_v4 = vsel %vm881_vm2, %v3678_v0, -inf  ;;  %v889_v14 = vsub.f32 %v3634_v19, %v887_v13 }
 0x21b   : > { %v892_v21 = vmul.f32 1.442695, %v889_v14 }
 0x21d   : > { %2913 = vpow2.f32 %v892_v21 }
 0x21e   : > { %v1091_v1 = vpop.f32.mrf.mxu1  ;;  %1390 = vrot.lane.b32.xlu0 %v3602_v43, %s3301_s15  ;;  %v993_v3 = vpop.f32.mrf.mxu2 }
 0x21f   : > { %v3685_v5 = vadd.f32 %v3630_v15, %v993_v3  ;;  %1118 = vmax.xlane.f32.xlu1 %v1117_v4 }
 0x221   : > { %v1000_v6 = vsel %vm881_vm2, %v3685_v5, -inf }
 0x222   : > { %1001 = vmax.xlane.f32.xlu2 %v1000_v6  ;;  %v3744_v58 = vpop.permute.xlu1 %1276 }
 0x223   : > { %v3705_v19 = vpop.eup %2913 }
 0x224   : > { %v897_v28 = vsel %vm881_vm2, %v3705_v19, 0.0 }
 0x226   : > { %v995_v7 = vpop.f32.mrf.mxu2  ;;  %v1203_v8 = vpop.f32.mrf.mxu1 }
 0x227   : > { %v3710_v29 = vadd.f32 %v3619_v2, %v1203_v8 }
 0x229   : > { %v1231_v32 = vsel %vm881_vm2, %v3710_v29, -inf }
 0x22a   : > { %v3752_v4 = vpop.permute.xlu1 %1369 }
 0x22e   : > { %v1113_v9 = vpop.f32.mrf.mxu2  ;;  %v1205_v10 = vpop.f32.mrf.mxu1 }
 0x22f   : > { %v3690_v11 = vadd.f32 %v3630_v15, %v1113_v9  ;;  %v3758_v9 = vpop.permute.xlu2 %1255 }
 0x231   : > { %v1120_v12 = vsel %vm881_vm2, %v3690_v11, -inf }
 0x232   : > { %1121 = vmax.xlane.f32.xlu2 %v1120_v12 }
 0x236   : > { %v1115_v16 = vpop.f32.mrf.mxu2  ;;  %v1317_v17 = vpop.f32.mrf.mxu1 }
 0x237   : > { %v3696_v18 = vadd.f32 %v3619_v2, %v1317_v17 }
 0x239   : > { %v1345_v20 = vsel %vm881_vm2, %v3696_v18, -inf }
 0x23a   : > { %1346 = vmax.xlane.f32.xlu1 %v1345_v20  ;;  %v1147_v20 = vsel %vm909_vm1, %v3664_v52, 0 }
 0x23e   : > { %v1227_v22 = vpop.f32.mrf.mxu2  ;;  %v1319_v23 = vpop.f32.mrf.mxu1 }
 0x23f   : > { %v3701_v24 = vadd.f32 %v3630_v15, %v1227_v22 }
 0x241   : > { %v1234_v25 = vsel %vm881_vm2, %v3701_v24, -inf }
 0x242   : > { %1235 = vmax.xlane.f32.xlu2 %v1234_v25 }
 0x246   : > { %v1229_v26 = vpop.f32.mrf.mxu2  ;;  %v1431_v27 = vpop.f32.mrf.mxu1 }
 0x247   : > { %v3725_v39 = vadd.f32 %v3619_v2, %v1431_v27 }
 0x248   : > { %898 = vadd.xlane.f32.xlu0 %v897_v28 }
 0x249   : > { %v1459_v44 = vsel %vm881_vm2, %v3725_v39, -inf }
 0x24e   : > { %v1341_v30 = vpop.f32.mrf.mxu2  ;;  %v1433_v31 = vpop.f32.mrf.mxu1 }
 0x24f   : > { %v3715_v33 = vadd.f32 %v3630_v15, %v1341_v30 }
 0x250   : > { %1232 = vmax.xlane.f32.xlu0 %v1231_v32 }
 0x251   : > { %v1348_v37 = vsel %vm881_vm2, %v3715_v33, -inf }
 0x256   : > { %v1343_v34 = vpop.f32.mrf.mxu2  ;;  %v1545_v35 = vpop.f32.mrf.mxu1 }
 0x257   : > { %v3718_v36 = vadd.f32 %v3619_v2, %v1545_v35 }
 0x258   : > { %1349 = vmax.xlane.f32.xlu0 %v1348_v37 }
 0x259   : > { %v1573_v38 = vsel %vm881_vm2, %v3718_v36, -inf }
 0x25a   : > { %1574 = vmax.xlane.f32.xlu1 %v1573_v38 }
 0x25e   : > { %v1455_v40 = vpop.f32.mrf.mxu2  ;;  %v1547_v42 = vpop.f32.mrf.mxu1 }
 0x25f   : > { %v3730_v45 = vadd.f32 %v3630_v15, %v1455_v40 }
 0x260   : > { %1460 = vmax.xlane.f32.xlu0 %v1459_v44  ;;  %v1168_v44 = vsel %vm909_vm1, %v1163_v57, 0 }
 0x261   : > { %v1462_v49 = vsel %vm881_vm2, %v3730_v45, -inf }
 0x266   : > { %v1457_v46 = vpop.f32.mrf.mxu2  ;;  %v1659_v47 = vpop.f32.mrf.mxu1 }
 0x267   : > { %v3733_v48 = vadd.f32 %v3619_v2, %v1659_v47 }
 0x268   : > { %1463 = vmax.xlane.f32.xlu0 %v1462_v49 }
 0x269   : > { %v1687_v50 = vsel %vm881_vm2, %v3733_v48, -inf }
 0x26a   : > { %1688 = vmax.xlane.f32.xlu1 %v1687_v50 }
 0x26e   : > { %v1569_v51 = vpop.f32.mrf.mxu2  ;;  %v1661_v53 = vpop.f32.mrf.mxu1 }
 0x26f   : > { %v3740_v54 = vadd.f32 %v3630_v15, %v1569_v51 }
 0x271   : > { %v1576_v56 = vsel %vm881_vm2, %v3740_v54, -inf }
 0x272   : > { %1577 = vmax.xlane.f32.xlu2 %v1576_v56 }
 0x276   : > { %v1571_v2 = vpop.f32.mrf.mxu2 }
 0x27d   : > { %v999_v59 = vpop.xlane.xlu0 %998 }
 0x27e   : > { %v1003_v60 = vsub.f32 %v3668_v55, %v999_v59  ;;  %v1683_v62 = vpop.f32.mrf.mxu2 }
 0x27f   : > { %v3748_v63 = vadd.f32 %v3630_v15, %v1683_v62 }
 0x280   : > { %v1005_v1 = vmul.f32 1.442695, %v1003_v60 }
 0x281   : > { %v1690_v3 = vsel %vm881_vm2, %v3748_v63, -inf }
 0x282   : > { %2915 = vpow2.f32 %v1005_v1  ;;  %1691 = vmax.xlane.f32.xlu2 %v1690_v3 }
 0x286   : > { %v1685_v6 = vpop.f32.mrf.mxu2 }
 0x288   : > { %v3754_v7 = vpop.eup %2915 }
 0x289   : > { %v1009_v8 = vsel %vm881_vm2, %v3754_v7, 0.0 }
 0x28a   : > { %1010 = vadd.xlane.f32.xlu2 %v1009_v8  ;;  %v896_v55 = vpop.xlane.xlu1 %895 }
 0x28b   : > { %2917 = vrcp.f32 %v896_v55 }
 0x290   : > { %v3779_v30 = vpop.permute.xlu0 %1390 }
 0x291   : > { %v2918_v15 = vpop.eup %2917 }
 0x292   : > { %v902_v10 = vmul.f32 %v2918_v15, %v3673_v61  ;;  %v1119_v12 = vpop.xlane.xlu1 %1118 }
 0x293   : > { %v1123_v13 = vsub.f32 %v3678_v0, %v1119_v12 }
 0x294   : > { %v904_v14 = vpack.c.bf16 %v902_v10, %v902_v10 }
 0x295   : > { %v1125_v16 = vmul.f32 1.442695, %v1123_v13  ;;  %v1002_v17 = vpop.xlane.xlu2 %1001 }
 0x296   : > { %v1004_v21 = vsub.f32 %v3685_v5, %v1002_v17  ;;  %2564 = vmatmul.msk.bf16.vlgmr.msrb.gmra.mxu3 %vm881_vm2, %v904_v14 }
 0x297   : > { %2919 = vpow2.f32 %v1125_v16  ;;  %1156 = vmatpush.bf16.msrb.mxu3 %v1147_v20 }
 0x298   : > { %v1007_v22 = vmul.f32 1.442695, %v1004_v21 }
 0x29a   : > { %2921 = vpow2.f32 %v1007_v22 }
 0x29d   : > { %v3766_v23 = vpop.eup %2919 }
 0x29e   : > { %v1129_v61 = vsel %vm881_vm2, %v3766_v23, 0.0 }
 0x29f   : > { %1130 = vadd.xlane.f32.xlu0 %v1129_v61 }
 0x2a0   : > { %v3770_v0 = vpop.eup %2921 }
 0x2a1   : > { %v1012_v25 = vsel %vm881_vm2, %v3770_v0, 0.0 }
 0x2a2   : > { %1013 = vadd.xlane.f32.xlu1 %v1012_v25 }
 0x2a5   : > { %v1122_v52 = vpop.xlane.xlu2 %1121 }
 0x2a6   : > { %v1124_v5 = vsub.f32 %v3690_v11, %v1122_v52 }
 0x2a8   : > { %v1127_v26 = vmul.f32 1.442695, %v1124_v5 }
 0x2aa   : > { %2923 = vpow2.f32 %v1127_v26  ;;  %v1261_v26 = vsel %vm909_vm1, %v3758_v9, 0 }
 0x2ad   : > { %v1347_v34 = vpop.xlane.xlu1 %1346 }
 0x2ae   : > { %v1351_v40 = vsub.f32 %v3696_v18, %v1347_v34 }
 0x2b0   : > { %v3775_v27 = vpop.eup %2923  ;;  %v1353_v46 = vmul.f32 1.442695, %v1351_v40  ;;  %v1375_v40 = vsel %vm909_vm1, %v3752_v4, 0 }
 0x2b1   : > { %v1132_v28 = vsel %vm881_vm2, %v3775_v27, 0.0 }
 0x2b2   : > { %1133 = vadd.xlane.f32.xlu2 %v1132_v28 }
 0x2bb   : > { %v899_v31 = vpop.xlane.xlu0 %898  ;;  %1504 = vrot.lane.b32.xlu1 %v3602_v43, %s3302_s18 }
 0x2bc   : > { %2925 = vrcp.f32 %v899_v31 }
 0x2c2   : > { %v2926_v32 = vpop.eup %2925 }
 0x2c3   : > { %v903_v35 = vmul.f32 %v2926_v32, %v3705_v19  ;;  %v1233_v11 = vpop.xlane.xlu0 %1232 }
 0x2c4   : > { %v1237_v37 = vsub.f32 %v3710_v29, %v1233_v11  ;;  %v1236_v29 = vpop.xlane.xlu2 %1235 }
 0x2c5   : > { %v905_v38 = vpack.c.bf16 %v903_v35, %v903_v35  ;;  %v1238_v51 = vsub.f32 %v3701_v24, %v1236_v29  ;;  %v1396_v29 = vsel %vm909_vm1, %v3779_v30, 0 }
 0x2c6   : > { %v1239_v42 = vmul.f32 1.442695, %v1237_v37 }
 0x2c7   : > { %2565 = vmatmul.msk.bf16.vlgmr.msra.gmra.mxu0 %vm881_vm2, %v905_v38  ;;  %v1241_v57 = vmul.f32 1.442695, %v1238_v51 }
 0x2c8   : > { %2927 = vpow2.f32 %v1239_v42  ;;  %1177 = vmatpush.bf16.msra.mxu0 %v1168_v44  ;;  %v1282_v44 = vsel %vm909_vm1, %v3744_v58, 0 }
 0x2c9   : > { %2929 = vpow2.f32 %v1353_v46 }
 0x2ca   : > { %1483 = vrot.lane.b32.xlu2 %v3592_v41, %s3302_s18 }
 0x2cb   : > { %v1350_v47 = vpop.xlane.xlu0 %1349 }
 0x2cc   : > { %v1352_v19 = vsub.f32 %v3715_v33, %v1350_v47 }
 0x2cd   : > { %v1575_v1 = vpop.xlane.xlu1 %1574 }
 0x2ce   : > { %v3790_v49 = vpop.eup %2927  ;;  %v1355_v50 = vmul.f32 1.442695, %v1352_v19  ;;  %v1579_v55 = vsub.f32 %v3718_v36, %v1575_v1 }
 0x2cf   : > { %v1243_v18 = vsel %vm881_vm2, %v3790_v49, 0.0  ;;  %v3796_v56 = vpop.eup %2929 }
 0x2d0   : > { %1244 = vadd.xlane.f32.xlu0 %v1243_v18  ;;  %2931 = vpow2.f32 %v1355_v50  ;;  %v1357_v2 = vsel %vm881_vm2, %v3796_v56, 0.0  ;;  %v1581_v15 = vmul.f32 1.442695, %v1579_v55 }
 0x2d1   : > { %2933 = vpow2.f32 %v1241_v57 }
 0x2d3   : > { %v1461_v53 = vpop.xlane.xlu0 %1460 }
 0x2d4   : > { %v1465_v33 = vsub.f32 %v3725_v39, %v1461_v53 }
 0x2d6   : > { %v3801_v60 = vpop.eup %2931  ;;  %v1467_v24 = vmul.f32 1.442695, %v1465_v33 }
 0x2d7   : > { %v1360_v6 = vsel %vm881_vm2, %v3801_v60, 0.0  ;;  %v3806_v8 = vpop.eup %2933 }
 0x2d8   : > { %1358 = vadd.xlane.f32.xlu0 %v1357_v2  ;;  %v1246_v39 = vsel %vm881_vm2, %v3806_v8, 0.0 }
 0x2db   : > { %v1464_v59 = vpop.xlane.xlu0 %1463 }
 0x2dc   : > { %v1466_v62 = vsub.f32 %v3730_v45, %v1464_v59 }
 0x2dd   : > { %v1689_v28 = vpop.xlane.xlu1 %1688 }
 0x2de   : > { %v1469_v3 = vmul.f32 1.442695, %v1466_v62  ;;  %v1693_v11 = vsub.f32 %v3733_v48, %v1689_v28 }
 0x2e0   : > { %2935 = vpow2.f32 %v1469_v3  ;;  %1361 = vadd.xlane.f32.xlu0 %v1360_v6  ;;  %v1695_v42 = vmul.f32 1.442695, %v1693_v11 }
 0x2e1   : > { %2937 = vpow2.f32 %v1467_v24 }
 0x2e2   : > { %2939 = vpow2.f32 %v1581_v15 }
 0x2e5   : > { %v1578_v10 = vpop.xlane.xlu2 %1577  ;;  %1247 = vadd.xlane.f32.xlu1 %v1246_v39 }
 0x2e6   : > { %v3811_v45 = vpop.eup %2935  ;;  %v1580_v12 = vsub.f32 %v3740_v54, %v1578_v10 }
 0x2e7   : > { %v1474_v13 = vsel %vm881_vm2, %v3811_v45, 0.0  ;;  %v3816_v16 = vpop.eup %2937 }
 0x2e8   : > { %v1583_v14 = vmul.f32 1.442695, %v1580_v12  ;;  %1475 = vadd.xlane.f32.xlu0 %v1474_v13  ;;  %v1471_v36 = vsel %vm881_vm2, %v3816_v16, 0.0  ;;  %v3820_v17 = vpop.eup %2939 }
 0x2e9   : > { %v1585_v21 = vsel %vm881_vm2, %v3820_v17, 0.0 }
 0x2ea   : > { %2941 = vpow2.f32 %v1583_v14 }
 0x2ed   : > { %1472 = vadd.xlane.f32.xlu1 %v1471_v36 }
 0x2f0   : > { %v3822_v20 = vpop.eup %2941 }
 0x2f1   : > { %v1588_v54 = vsel %vm881_vm2, %v3822_v20, 0.0 }
 0x2f2   : > { %1589 = vadd.xlane.f32.xlu0 %v1588_v54 }
 0x2f3   : > { %1586 = vadd.xlane.f32.xlu2 %v1585_v21 }
 0x2f5   : > { %v1692_v22 = vpop.xlane.xlu2 %1691 }
 0x2f6   : > { %v1694_v38 = vsub.f32 %v3748_v63, %v1692_v22 }
 0x2fd   : > { %v1011_v61 = vpop.xlane.xlu2 %1010 }
 0x2fe   : > { %2943 = vrcp.f32 %v1011_v61 }
 0x304   : > { %v2944_v25 = vpop.eup %2943 }
 0x305   : > { %v1017_v52 = vmul.f32 %v2944_v25, %v3754_v7 }
 0x306   : > { %1618 = vrot.lane.b32.xlu1 %v3602_v43, %s3303_s2  ;;  %1597 = vrot.lane.b32.xlu0 %v3592_v41, %s3303_s2 }
 0x307   : > { %v1019_v5 = vpack.c.bf16 %v1017_v52, %v1017_v52 }
 0x309   : > { %2568 = vmatmul.msk.bf16.vlgmr.msra.gmra.mxu3 %vm881_vm2, %v1019_v5 }
 0x30a   : > { %1270 = vmatpush.bf16.msra.mxu3 %v1261_v26 }
 0x30b   : > { %1711 = vrot.lane.b32.xlu2 %v3592_v41, %s3304_s4 }
 0x312   : > { %v1131_v31 = vpop.xlane.xlu0 %1130 }
 0x313   : > { %2945 = vrcp.f32 %v1131_v31  ;;  %1732 = vrot.lane.b32.xlu2 %v3602_v43, %s3304_s4 }
 0x315   : > { %v1014_v7 = vpop.xlane.xlu1 %1013 }
 0x316   : > { %2947 = vrcp.f32 %v1014_v7 }
 0x317   : > { %2949 = vpow2.f32 %v1695_v42 }
 0x319   : > { %v2946_v32 = vpop.eup %2945  ;;  %v3840_v34 = vpop.f32.mrf.mxu3 }
 0x31a   : > { %v1137_v35 = vmul.f32 %v2946_v32, %v3766_v23  ;;  %v1697_v23 = vmul.f32 1.442695, %v1694_v38 }
 0x31c   : > { %v2948_v9 = vpop.eup %2947  ;;  %v1139_v37 = vpack.c.bf16 %v1137_v35, %v1137_v35  ;;  %2951 = vpow2.f32 %v1697_v23 }
 0x31d   : > { %v1018_v41 = vmul.f32 %v2948_v9, %v3770_v0  ;;  %v3852_v63 = vpop.eup %2949 }
 0x31e   : > { %2572 = vmatmul.msk.bf16.vlgmr.msrb.gmra.mxu3 %vm881_vm2, %v1139_v37  ;;  %v1699_v18 = vsel %vm881_vm2, %v3852_v63, 0.0 }
 0x31f   : > { %v1020_v43 = vpack.c.bf16 %v1018_v41, %v1018_v41  ;;  %1384 = vmatpush.bf16.msrb.mxu3 %v1375_v40 }
 0x321   : > { %v924_v46 = vpop.f32.mrf.mxu3  ;;  %2569 = vmatmul.msk.bf16.vlgmr.msrb.gmra.mxu0 %vm881_vm2, %v1020_v43 }
 0x322   : > { %1291 = vmatpush.bf16.msrb.mxu0 %v1282_v44  ;;  %v3854_v4 = vpop.eup %2951 }
 0x323   : > { %v1702_v58 = vsel %vm881_vm2, %v3854_v4, 0.0 }
 0x325   : > { %v1134_v48 = vpop.xlane.xlu2 %1133 }
 0x326   : > { %2953 = vrcp.f32 %v1134_v48 }
 0x32c   : > { %v2954_v0 = vpop.eup %2953 }
 0x32d   : > { %v1138_v47 = vmul.f32 %v2954_v0, %v3775_v27  ;;  %v1484_v57 = vpop.permute.xlu2 %1483  ;;  %v1505_v1 = vpop.permute.xlu1 %1504 }
 0x32e   : > { %v1489_v62 = vsel %vm909_vm1, %v1484_v57, 0  ;;  %v1510_v12 = vsel %vm909_vm1, %v1505_v1, 0 }
 0x32f   : > { %v1140_v19 = vpack.c.bf16 %v1138_v47, %v1138_v47 }
 0x330   : > { %1703 = vadd.xlane.f32.xlu0 %v1702_v58  ;;  %1700 = vadd.xlane.f32.xlu1 %v1699_v18 }
 0x331   : > { %2573 = vmatmul.msk.bf16.vlgmr.msra.gmra.mxu0 %vm881_vm2, %v1140_v19 }
 0x332   : > { %1405 = vmatpush.bf16.msra.mxu0 %v1396_v29 }
 0x343   : > { %v1245_v50 = vpop.xlane.xlu0 %1244 }
 0x344   : > { %2955 = vrcp.f32 %v1245_v50  ;;  %v3864_v51 = vpop.f32.mrf.mxu0 }
 0x34a   : > { %v2956_v27 = vpop.eup %2955 }
 0x34b   : > { %v1251_v53 = vmul.f32 %v2956_v27, %v3790_v49  ;;  %v1359_v59 = vpop.xlane.xlu0 %1358 }
 0x34c   : > { %v943_v2 = vpop.f32.mrf.mxu0  ;;  %2957 = vrcp.f32 %v1359_v59 }
 0x34d   : > { %v1253_v33 = vpack.c.bf16 %v1251_v53, %v1251_v53 }
 0x34f   : > { %2576 = vmatmul.msk.bf16.vlgmr.msra.gmra.mxu3 %vm881_vm2, %v1253_v33 }
 0x350   : > { %1498 = vmatpush.bf16.msra.mxu3 %v1489_v62 }
 0x352   : > { %v2958_v30 = vpop.eup %2957 }
 0x353   : > { %v1365_v24 = vmul.f32 %v2958_v30, %v3796_v56  ;;  %v1362_v55 = vpop.xlane.xlu0 %1361 }
 0x355   : > { %v1367_v6 = vpack.c.bf16 %v1365_v24, %v1365_v24 }
 0x358   : > { %v1248_v3 = vpop.xlane.xlu1 %1247 }
 0x359   : > { %2959 = vrcp.f32 %v1248_v3 }
 0x35b   : > { %v1476_v14 = vpop.xlane.xlu0 %1475 }
 0x35f   : > { %v2960_v39 = vpop.eup %2959  ;;  %2580 = vmatmul.msk.bf16.vlgmr.msrb.gmra.mxu3 %vm881_vm2, %v1367_v6 }
 0x360   : > { %v1252_v49 = vmul.f32 %v2960_v39, %v3806_v8  ;;  %v1473_v15 = vpop.xlane.xlu1 %1472 }
 0x361   : > { %2961 = vrcp.f32 %v1473_v15 }
 0x362   : > { %v1254_v10 = vpack.c.bf16 %v1252_v49, %v1252_v49  ;;  %2963 = vrcp.f32 %v1362_v55 }
 0x364   : > { %2577 = vmatmul.msk.bf16.vlgmr.msrb.gmra.mxu0 %vm881_vm2, %v1254_v10 }
 0x365   : > { %1519 = vmatpush.bf16.msrb.mxu0 %v1510_v12  ;;  %v1590_v8 = vpop.xlane.xlu0 %1589 }
 0x366   : > { %v1587_v21 = vpop.xlane.xlu2 %1586 }
 0x367   : > { %v2962_v13 = vpop.eup %2961  ;;  %2965 = vrcp.f32 %v1587_v21 }
 0x368   : > { %v1479_v56 = vmul.f32 %v2962_v13, %v3816_v16  ;;  %v2964_v36 = vpop.eup %2963  ;;  %2967 = vrcp.f32 %v1476_v14 }
 0x369   : > { %v1366_v22 = vmul.f32 %v2964_v36, %v3801_v60  ;;  %2969 = vrcp.f32 %v1590_v8  ;;  %v2729_v8 = vld [vmem:[#allocation10 + $0x38] sm:$0xff] }
 0x36a   : > { %v1481_v54 = vpack.c.bf16 %v1479_v56, %v1479_v56  ;;  %1898 = vmatpush.bf16.msra.mxu1 %v2729_v8 }
 0x36b   : > { %v1368_v61 = vpack.c.bf16 %v1366_v22, %v1366_v22 }
 0x36d   : > { %v2966_v25 = vpop.eup %2965 }
 0x36e   : > { %v1712_v52 = vpop.permute.xlu2 %1711  ;;  %v1593_v28 = vmul.f32 %v2966_v25, %v3820_v17  ;;  %v2968_v7 = vpop.eup %2967  ;;  %v2727_v25 = vld [vmem:[#allocation10 + $0x28] sm:$0xff] }
 0x36f   : > { %2584 = vmatmul.msk.bf16.vlgmr.msra.gmra.mxu3 %vm881_vm2, %v1481_v54  ;;  %v1717_v60 = vsel %vm909_vm1, %v1712_v52, 0  ;;  %v1480_v35 = vmul.f32 %v2968_v7, %v3811_v45  ;;  %v2970_v17 = vpop.eup %2969  ;;  %v2726_v52 = vld [vmem:[#allocation10 + $0x20] sm:$0xff] }
 0x370   : > { %v1595_v32 = vpack.c.bf16 %v1593_v28, %v1593_v28  ;;  %v1594_v41 = vmul.f32 %v2970_v17, %v3822_v20  ;;  %v2723_v28 = vld [vmem:[#allocation10 + $0x8] sm:$0xff] }
 0x371   : > { %v1482_v11 = vpack.c.bf16 %v1480_v35, %v1480_v35 }
 0x372   : > { %v1596_v40 = vpack.c.bf16 %v1594_v41, %v1594_v41 }
 0x374   : > { %2581 = vmatmul.msk.bf16.vlgmr.msra.gmra.mxu0 %vm881_vm2, %v1368_v61  ;;  %v2728_v61 = vld [vmem:[#allocation10 + $0x30] sm:$0xff] }
 0x375   : > { %1899 = vmatpush.bf16.msra.mxu1 %v2728_v61 }
 0x376   : > { %v1733_v9 = vpop.permute.xlu2 %1732 }
 0x377   : > { %v1738_v37 = vsel %vm909_vm1, %v1733_v9, 0 }
 0x378   : > { %v1598_v5 = vpop.permute.xlu0 %1597  ;;  %v1619_v26 = vpop.permute.xlu1 %1618 }
 0x379   : > { %v1603_v16 = vsel %vm909_vm1, %v1598_v5, 0  ;;  %v1624_v31 = vsel %vm909_vm1, %v1619_v26, 0  ;;  %1900 = vmatpush.bf16.msra.mxu1 %v2727_v25  ;;  %v2725_v5 = vld [vmem:[#allocation10 + $0x18] sm:$0xff]  ;;  %v2724_v26 = vld [vmem:[#allocation10 + $0x10] sm:$0xff] }
 0x37a   : > { %1612 = vmatpush.bf16.msrb.mxu3 %v1603_v16  ;;  %1633 = vmatpush.bf16.msra.mxu0 %v1624_v31  ;;  %v2722_v16 = vld [vmem:[#allocation10] sm:$0xff] }
 0x37d   : > { %1901 = vmatpush.bf16.msra.mxu1 %v2726_v52 }
 0x37e   : > { %1726 = vmatpush.bf16.msra.mxu3 %v1717_v60 }
 0x37f   : > { %2588 = vmatmul.msk.bf16.vlgmr.msrb.gmra.mxu3 %vm881_vm2, %v1595_v32 }
 0x381   : > { %1902 = vmatpush.bf16.msra.mxu1 %v2725_v5  ;;  %v2737_v5 = vld [vmem:[#allocation11 + $0x38] sm:$0xff] }
 0x382   : > { %2042 = vmatpush.bf16.msra.mxu2 %v2737_v5 }
 0x384   : > { %2585 = vmatmul.msk.bf16.vlgmr.msrb.gmra.mxu0 %vm881_vm2, %v1482_v11 }
 0x385   : > { %1747 = vmatpush.bf16.msrb.mxu0 %v1738_v37  ;;  %1903 = vmatpush.bf16.msra.mxu1 %v2724_v26  ;;  %v2736_v26 = vld [vmem:[#allocation11 + $0x30] sm:$0xff] }
 0x386   : > { %2043 = vmatpush.bf16.msra.mxu2 %v2736_v26 }
 0x389   : > { %1904 = vmatpush.bf16.msra.mxu1 %v2723_v28  ;;  %v2735_v28 = vld [vmem:[#allocation11 + $0x28] sm:$0xff] }
 0x38a   : > { %2044 = vmatpush.bf16.msra.mxu2 %v2735_v28 }
 0x38c   : > { %v1041_v38 = vpop.f32.mrf.mxu3 }
 0x38d   : > { %1905 = vmatpush.bf16.msra.mxu1 %v2722_v16  ;;  %v2734_v16 = vld [vmem:[#allocation11 + $0x20] sm:$0xff] }
 0x38e   : > { %2045 = vmatpush.bf16.msra.mxu2 %v2734_v16 }
 0x394   : > { %v1043_v43 = vpop.f32.mrf.mxu3  ;;  %2589 = vmatmul.msk.bf16.vlgmr.msra.gmra.mxu0 %vm881_vm2, %v1596_v40 }
 0x39e   : > { %v1065_v42 = vpop.f32.mrf.mxu0 }
 0x39f   : > { %v2867_v45 = vpack.i.bf16 %v1065_v42, %v1041_v38 }
 0x3a1   : > { %v1158_v44 = vpop.f32.mrf.mxu3  ;;  %2868 = vrot.lane.b32.xlu1 %v2867_v45, %s3304_s4 }
 0x3a3   : > { %v1704_v23 = vpop.xlane.xlu0 %1703  ;;  %v1701_v46 = vpop.xlane.xlu1 %1700 }
 0x3a4   : > { %2971 = vrcp.f32 %v1704_v23 }
 0x3a5   : > { %2973 = vrcp.f32 %v1701_v46 }
 0x3a6   : > { %v1067_v48 = vpop.f32.mrf.mxu0 }
 0x3a9   : > { %v1160_v0 = vpop.f32.mrf.mxu3 }
 0x3aa   : > { %v2972_v47 = vpop.eup %2971 }
 0x3ab   : > { %v2974_v19 = vpop.eup %2973  ;;  %v1708_v58 = vmul.f32 %v2972_v47, %v3854_v4 }
 0x3ac   : > { %v1707_v20 = vmul.f32 %v2974_v19, %v3852_v63 }
 0x3ad   : > { %v1710_v18 = vpack.c.bf16 %v1708_v58, %v1708_v58 }
 0x3ae   : > { %v1709_v29 = vpack.c.bf16 %v1707_v20, %v1707_v20  ;;  %v1179_v50 = vpop.f32.mrf.mxu0 }
 0x3af   : > { %v2872_v27 = vpack.i.bf16 %v1179_v50, %v1158_v44  ;;  %2593 = vmatmul.msk.bf16.vlgmr.msrb.gmra.mxu0 %vm881_vm2, %v1710_v18 }
 0x3b0   : > { %2592 = vmatmul.msk.bf16.vlgmr.msra.gmra.mxu3 %vm881_vm2, %v1709_v29 }
 0x3b1   : > { %2873 = vrot.lane.b32.xlu2 %v2872_v27, %s3303_s2 }
 0x3b6   : > { %v1181_v53 = vpop.f32.mrf.mxu0 }
 0x3d2   : > { %v1272_v57 = vpop.f32.mrf.mxu3 }
 0x3da   : > { %v1274_v2 = vpop.f32.mrf.mxu3 }
 0x3e1   : > { %v1293_v33 = vpop.f32.mrf.mxu0 }
 0x3e2   : > { %v2877_v59 = vpack.i.bf16 %v1293_v33, %v1272_v57  ;;  %v1386_v62 = vpop.f32.mrf.mxu3 }
 0x3e4   : > { %2878 = vrot.lane.b32.xlu0 %v2877_v59, %s3302_s18  ;;  %s2746_s18 = sshll.u32 %s3407_s20, 4  ;;  %s2286_s20 = scalar_lea.sflag [#allocation4], %s3530_s22 }
 0x3e5   : > { %s2297_s23 = scalar_lea.hbm %s4055_s10, %s2746_s18 }
 0x3e6   : > { %s2300_s8 = sshll.u32 %s2297_s23, 4  ;;  %s2301_s8 = int_to_ptr.hbm [resolvable:$true] %s2300_s8 }
 0x3e7   : > { %s3215_s29 = sshra.s32 %s2301_s8, 4  ;;  %s3216_s29 = int_to_ptr.hbm [resolvable:$true] %s3215_s29 }
 0x3e8   : > { %s3217_s0 = scalar_lea.hbm %s3216_s29, 16  ;;  %p3222_p7 = scmp.lt.s32.totalorder %s3216_s29, %s4055_s10 }
 0x3e9   : > { %v1295_v4 = vpop.f32.mrf.mxu0  ;;  %p3218_p1 = scmp.ne.s32.totalorder %s3216_s29, %s3217_s0  ;;  %p3223_p9 = scmp.lt.s32.totalorder %s3221_s21, %s3217_s0 }
 0x3ea   : > { %v1388_v63 = vpop.f32.mrf.mxu3  ;;  %v2904_v4 = vld [vmem:[%s4010_s5] ss:$0 sm:$0xff] }
 0x3eb   : > { %p3219_p3 = pnand %p3218_p1, %p3473_p0  ;;  %p3224_p5 = por %p3223_p9, %p3222_p7 }
 0x3ed   : > { %p3220_p13 = pneg %p3219_p3 }
 0x3ef   : > { %p3225_p8 = pnand %p3224_p5, %p3220_p13 }
 0x3f1   : > { %v1407_v1 = vpop.f32.mrf.mxu0 }
 0x3f2   : > { %v2882_v30 = vpack.i.bf16 %v1407_v1, %v1386_v62  ;;  %v1500_v3 = vpop.f32.mrf.mxu3 }
 0x3f4   : > { %2883 = vrot.lane.b32.xlu2 %v2882_v30, %s3301_s15  ;;  %v3907_v30 = vld [vmem:[%s3536_s25] sm:$0xff]  ;;  %s4054_s15 = sld [smem:[#allocation33_spill]] }
 0x3f9   : > { %v1409_v24 = vpop.f32.mrf.mxu0 }
 0x3fa   : > { %v1502_v6 = vpop.f32.mrf.mxu3 }
 0x401   : > { %v1521_v55 = vpop.f32.mrf.mxu0 }
 0x402   : > { %v2887_v39 = vpack.i.bf16 %v1521_v55, %v1500_v3  ;;  %v1614_v49 = vpop.f32.mrf.mxu3  ;;  %v3911_v55 = vld [vmem:[%s3536_s25 + $0x8] sm:$0xff] }
 0x404   : > { %2888 = vrot.lane.b32.xlu2 %v2887_v39, %s3300_s28 }
 0x409   : > { %v1523_v15 = vpop.f32.mrf.mxu0 }
 0x40a   : > { %v1616_v10 = vpop.f32.mrf.mxu3 }
 0x40b   : > { %v2874_v31 = vpop.permute.xlu2 %2873 }
 0x40c   : > { %v2876_v40 = vunpack.i.h.bf16 %v2874_v31  ;;  %v2875_v43 = vunpack.i.l.bf16 %v2874_v31  ;;  %v2733_v31 = vld [vmem:[#allocation11 + $0x18] sm:$0xff] }
 0x40d   : > { %2046 = vmatpush.bf16.msra.mxu2 %v2733_v31 }
 0x411   : > { %v1635_v12 = vpop.f32.mrf.mxu0 }
 0x412   : > { %v2892_v13 = vpack.i.bf16 %v1635_v12, %v1614_v49  ;;  %v3305_v49 = vmov 128.0  }
 0x413   : > { %v2869_v7 = vpop.permute.xlu1 %2868  ;;  %2975 = vrcp.f32 %v3305_v49 }
 0x414   : > { %2893 = vrot.lane.b32.xlu1 %v2892_v13, %s3298_s27  ;;  %v2871_v32 = vunpack.i.h.bf16 %v2869_v7  ;;  %v2870_v35 = vunpack.i.l.bf16 %v2869_v7  ;;  %v2731_v7 = vld [vmem:[#allocation11 + $0x8] sm:$0xff]  ;;  %s4053_s27 = sld [smem:[#allocation32_spill]] }
 0x416   : > { %v1810_v37 = vsel %vm840_vm0, %v3864_v51, %v2871_v32  ;;  %v1809_v17 = vsel %vm840_vm0, %v3840_v34, %v2870_v35  ;;  %v2730_v35 = vld [vmem:[#allocation11] sm:$0xff] }
 0x417   : > { %v1812_v45 = vsel %vm1811_vm3, %v1809_v17, %v2875_v43  ;;  %v1813_v44 = vsel %vm1811_vm3, %v1810_v37, %v2876_v40 }
 0x419   : > { %v1637_v14 = vpop.f32.mrf.mxu0  ;;  %v2976_v15 = vpop.eup %2975 }
 0x41a   : > { %v1921_v10 = vmul.f32 128.0, %v2976_v15  ;;  %vm1925_vm9 = vweird.f32 %v2976_v15 }
 0x41c   : > { %v1922_v12 = vsub.f32 1.0, %v1921_v10  ;;  %v2743_v10 = vld [vmem:[#allocation13 + $0x28] sm:$0xff] }
 0x41e   : > { %v1923_v13 = vmul.f32 %v2976_v15, %v1922_v12 }
 0x420   : > { %v1924_v14 = vadd.f32 %v2976_v15, %v1923_v13 }
 0x42c   : > { %v1749_v56 = vpop.f32.mrf.mxu0 }
 0x433   : > { %v1728_v36 = vpop.f32.mrf.mxu3 }
 0x434   : > { %v2897_v54 = vpack.i.bf16 %v1749_v56, %v1728_v36  ;;  %v1751_v21 = vpop.f32.mrf.mxu0  ;;  %v3914_v56 = vsel %vm1925_vm9, %v2976_v15, %v1924_v14 }
 0x436   : > { %2898 = vrot.lane.b32.xlu2 %v2897_v54, %s3299_s12 }
 0x43b   : > { %v1730_v22 = vpop.f32.mrf.mxu3 }
 0x44e   : > { %v2884_v60 = vpop.permute.xlu2 %2883 }
 0x44f   : > { %v2886_v47 = vunpack.i.h.bf16 %v2884_v60  ;;  %v2885_v19 = vunpack.i.l.bf16 %v2884_v60  ;;  %v2732_v60 = vld [vmem:[#allocation11 + $0x10] sm:$0xff] }
 0x450   : > { %2047 = vmatpush.bf16.msra.mxu2 %v2732_v60 }
 0x454   : > { %2048 = vmatpush.bf16.msra.mxu2 %v2731_v7 }
 0x456   : > { %v2879_v9 = vpop.permute.xlu0 %2878 }
 0x457   : > { %v2881_v38 = vunpack.i.h.bf16 %v2879_v9  ;;  %v2880_v41 = vunpack.i.l.bf16 %v2879_v9 }
 0x458   : > { %2049 = vmatpush.bf16.msra.mxu2 %v2730_v35 }
 0x459   : > { %v1815_v23 = vsel %vm1814_vm4, %v1812_v45, %v2880_v41  ;;  %v1816_v46 = vsel %vm1814_vm4, %v1813_v44, %v2881_v38 }
 0x45a   : > { %v1818_v34 = vsel %vm1817_vm5, %v1815_v23, %v2885_v19  ;;  %v1819_v20 = vsel %vm1817_vm5, %v1816_v46, %v2886_v47 }
 0x45e   : > { %v2889_v11 = vpop.permute.xlu2 %2888 }
 0x45f   : > { %v2891_v48 = vunpack.i.h.bf16 %v2889_v11  ;;  %v2890_v0 = vunpack.i.l.bf16 %v2889_v11 }
 0x461   : > { %v1821_v29 = vsel %vm1820_vm6, %v1818_v34, %v2890_v0  ;;  %v1822_v50 = vsel %vm1820_vm6, %v1819_v20, %v2891_v48 }
 0x486   : > { %v2894_v42 = vpop.permute.xlu1 %2893 }
 0x487   : > { %v2896_v51 = vunpack.i.h.bf16 %v2894_v42  ;;  %v2895_v58 = vunpack.i.l.bf16 %v2894_v42 }
 0x489   : > { %v1824_v57 = vsel %vm1823_vm7, %v1821_v29, %v2895_v58  ;;  %v1825_v2 = vsel %vm1823_vm7, %v1822_v50, %v2896_v51  ;;  %v2905_v58 = vld [vmem:[%s4011_s6] ss:$0 sm:$0xff] }
 0x48a   : > { %v2906_v50 = vld [vmem:[%s4012_s7] ss:$0 sm:$0xff] }
 0x490   : > { %v2899_v18 = vpop.permute.xlu2 %2898 }
 0x491   : > { %v2901_v27 = vunpack.i.h.bf16 %v2899_v18  ;;  %v2900_v53 = vunpack.i.l.bf16 %v2899_v18 }
 0x493   : > { %v1827_v33 = vsel %vm1826_vm8, %v1824_v57, %v2900_v53  ;;  %v1828_v59 = vsel %vm1826_vm8, %v1825_v2, %v2901_v27 }
 0x494   : > { %v1829_v62 = vpack.c.bf16 %v1828_v59, %v1827_v33  ;;  %v2907_v33 = vld [vmem:[%s4014_s9] ss:$0 sm:$0xff] }
 0x496   : > { %1906 = vmatmul.bf16.vlgmr.msra.gmra.mxu1 %v1829_v62 }
 0x513   : > { %v1907_v63 = vpop.f32.mrf.mxu1 }
 0x514   : > { %v1908_v1 = vadd.f32 %v2904_v4, %v1907_v63 }
 0x516   : > { %v1912_v3 = vadd.f32 %v3907_v30, %v1908_v1 }
 0x518   : > { %1916 = vadd.xlane.f32.xlu0 %v1912_v3 }
 0x51b   : > { %v1909_v24 = vpop.f32.mrf.mxu1 }
 0x51c   : > { %v1910_v6 = vadd.f32 %v2904_v4, %v1909_v24  ;;  %v2745_v4 = vld [vmem:[#allocation13 + $0x38] sm:$0xff] }
 0x51d   : > { %2213 = vmatpush.bf16.msrb.mxu3 %v2745_v4 }
 0x51e   : > { %v1913_v39 = vadd.f32 %v3911_v55, %v1910_v6 }
 0x520   : > { %1918 = vadd.xlane.f32.xlu1 %v1913_v39 }
 0x58b   : > { %v1917_v36 = vpop.xlane.xlu0 %1916 }
 0x58c   : > { %v1927_v54 = vmul.f32 %v3914_v56, %v1917_v36 }
 0x58e   : > { %v1929_v21 = vsub.f32 %v1912_v3, %v1927_v54  ;;  %v2744_v3 = vld [vmem:[#allocation13 + $0x30] sm:$0xff]  ;;  %v2742_v54 = vld [vmem:[#allocation13 + $0x20] sm:$0xff] }
 0x58f   : > { %2214 = vmatpush.bf16.msrb.mxu3 %v2744_v3 }
 0x590   : > { %v1931_v22 = vmul.f32 %v1929_v21, %v1929_v21 }
 0x592   : > { %1933 = vadd.xlane.f32.xlu2 %v1931_v22 }
 0x593   : > { %v1919_v8 = vpop.xlane.xlu1 %1918  ;;  %2215 = vmatpush.bf16.msrb.mxu3 %v2743_v10 }
 0x594   : > { %v1928_v61 = vmul.f32 %v3914_v56, %v1919_v8 }
 0x596   : > { %v1930_v25 = vsub.f32 %v1913_v39, %v1928_v61 }
 0x597   : > { %2216 = vmatpush.bf16.msrb.mxu3 %v2742_v54 }
 0x598   : > { %v1932_v52 = vmul.f32 %v1930_v25, %v1930_v25 }
 0x59a   : > { %1935 = vadd.xlane.f32.xlu0 %v1932_v52  ;;  %v2741_v52 = vld [vmem:[#allocation13 + $0x18] sm:$0xff] }
 0x59b   : > { %2217 = vmatpush.bf16.msrb.mxu3 %v2741_v52 }
 0x605   : > { %v1934_v32 = vpop.xlane.xlu2 %1933 }
 0x606   : > { %v1937_v9 = vmul.f32 %v1934_v32, %v3914_v56  ;;  %v2740_v32 = vld [vmem:[#allocation13 + $0x10] sm:$0xff] }
 0x607   : > { %2218 = vmatpush.bf16.msrb.mxu3 %v2740_v32 }
 0x608   : > { %v1939_v11 = vadd.f32 1e-05, %v1937_v9 }
 0x60a   : > { %2977 = vrsqrt.f32 %v1939_v11  ;;  %vm1947_vm11 = vweird.f32 %v1939_v11 }
 0x60d   : > { %v1936_v37 = vpop.xlane.xlu0 %1935 }
 0x60e   : > { %v1938_v17 = vmul.f32 %v1936_v37, %v3914_v56 }
 0x610   : > { %v2978_v38 = vpop.eup %2977  ;;  %v1940_v41 = vadd.f32 1e-05, %v1938_v17 }
 0x611   : > { %v1942_v40 = vmul.f32 %v2978_v38, %v1939_v11  ;;  %vm1948_vm10 = vweird.f32 %v2978_v38 }
 0x612   : > { %2979 = vrsqrt.f32 %v1940_v41  ;;  %vm1949_vm12 = vmor %vm1947_vm11, %vm1948_vm10  ;;  %vm1957_vm14 = vweird.f32 %v1940_v41 }
 0x613   : > { %v1943_v43 = vmul.f32 %v2978_v38, %v1942_v40  ;;  %v2739_v40 = vld [vmem:[#allocation13 + $0x8] sm:$0xff] }
 0x614   : > { %2219 = vmatpush.bf16.msrb.mxu3 %v2739_v40 }
 0x615   : > { %v1944_v42 = vmul.f32 0.5, %v1943_v43 }
 0x617   : > { %v1945_v45 = vsub.f32 1.5, %v1944_v42 }
 0x618   : > { %v2980_v44 = vpop.eup %2979 }
 0x619   : > { %v1946_v23 = vmul.f32 %v2978_v38, %v1945_v45  ;;  %v1952_v46 = vmul.f32 %v2980_v44, %v1940_v41  ;;  %vm1958_vm13 = vweird.f32 %v2980_v44 }
 0x61a   : > { %vm1959_vm15 = vmor %vm1957_vm14, %vm1958_vm13 }
 0x61b   : > { %v1953_v48 = vmul.f32 %v2980_v44, %v1952_v46  ;;  %v1950_v0 = vsel %vm1949_vm12, %v2978_v38, %v1946_v23  ;;  %v2738_v46 = vld [vmem:[#allocation13] sm:$0xff] }
 0x61c   : > { %v1961_v51 = vmul.f32 %v1950_v0, %v1929_v21  ;;  %2220 = vmatpush.bf16.msrb.mxu3 %v2738_v46 }
 0x61d   : > { %v1954_v47 = vmul.f32 0.5, %v1953_v48 }
 0x61e   : > { %v1966_v29 = vmul.f32 %v2905_v58, %v1961_v51 }
 0x61f   : > { %v1955_v19 = vsub.f32 1.5, %v1954_v47 }
 0x620   : > { %v3926_v53 = vadd.f32 %v2906_v50, %v1966_v29 }
 0x621   : > { %v1956_v34 = vmul.f32 %v2980_v44, %v1955_v19 }
 0x623   : > { %v1960_v20 = vsel %vm1959_vm15, %v2980_v44, %v1956_v34 }
 0x624   : > { %v1962_v18 = vmul.f32 %v1960_v20, %v1930_v25 }
 0x626   : > { %v1967_v27 = vmul.f32 %v2905_v58, %v1962_v18 }
 0x628   : > { %v3928_v57 = vadd.f32 %v2906_v50, %v1967_v27 }
 0x62a   : > { %v1973_v2 = vpack.c.bf16 %v3928_v57, %v3926_v53 }
 0x62c   : > { %2050 = vmatmul.bf16.vlgmr.msra.gmra.mxu2 %v1973_v2 }
 0x6af   : > { %v2051_v59 = vpop.f32.mrf.mxu2 }
 0x6b0   : > { %v3935_v62 = vadd.f32 %v2907_v33, %v2051_v59 }
 0x6b2   : > { %v3938_v63 = vmul.f32 0.70710677, %v3935_v62 }
 0x6b4   : > { %v2060_v1 = vmul.f32 %v3938_v63, %v3938_v63 }
 0x6b6   : > { %v2061_v24 = vmin.f32 %v2060_v1, 16.0 }
 0x6b7   : > { %v2053_v6 = vpop.f32.mrf.mxu2 }
 0x6b8   : > { %v2062_v39 = vmul.f32 2.1237322e-06, %v2061_v24  ;;  %v2073_v49 = vmul.f32 3.8918573e-05, %v2061_v24  ;;  %v3942_v15 = vadd.f32 %v2907_v33, %v2053_v6 }
 0x6ba   : > { %v2063_v12 = vadd.f32 0.00028619796, %v2062_v39  ;;  %v2074_v13 = vadd.f32 0.001143296, %v2073_v49  ;;  %v3945_v14 = vmul.f32 0.70710677, %v3942_v15 }
 0x6bb   : > { %v2057_v32 = vmul.f32 0.5, %v3942_v15 }
 0x6bc   : > { %v2075_v36 = vmul.f32 %v2074_v13, %v2061_v24  ;;  %v2100_v21 = vmul.f32 %v3945_v14, %v3945_v14  ;;  %v2064_v22 = vmul.f32 %v2063_v12, %v2061_v24 }
 0x6be   : > { %v2076_v8 = vadd.f32 0.014752088, %v2075_v36  ;;  %v2101_v61 = vmin.f32 %v2100_v21, 16.0  ;;  %v2065_v28 = vadd.f32 0.0036580483, %v2064_v22 }
 0x6c0   : > { %v2077_v25 = vmul.f32 %v2076_v8, %v2061_v24  ;;  %v2102_v5 = vmul.f32 2.1237322e-06, %v2101_v61  ;;  %v2113_v26 = vmul.f32 3.8918573e-05, %v2101_v61  ;;  %v2066_v11 = vmul.f32 %v2065_v28, %v2061_v24 }
 0x6c2   : > { %v2078_v16 = vadd.f32 0.112945676, %v2077_v25  ;;  %v2103_v31 = vadd.f32 0.00028619796, %v2102_v5  ;;  %v2114_v60 = vadd.f32 0.001143296, %v2113_v26 }
 0x6c3   : > { %v2067_v42 = vadd.f32 0.05243302, %v2066_v11 }
 0x6c4   : > { %v2079_v7 = vmul.f32 %v2078_v16, %v2061_v24  ;;  %v2104_v35 = vmul.f32 %v2103_v31, %v2101_v61  ;;  %v2115_v9 = vmul.f32 %v2114_v60, %v2101_v61 }
 0x6c5   : > { %v2068_v0 = vmul.f32 %v2067_v42, %v2061_v24 }
 0x6c6   : > { %v2080_v37 = vadd.f32 0.4994258, %v2079_v7  ;;  %v2105_v17 = vadd.f32 0.0036580483, %v2104_v35  ;;  %v2116_v38 = vadd.f32 0.014752088, %v2115_v9 }
 0x6c7   : > { %v2069_v34 = vadd.f32 0.18741608, %v2068_v0  ;;  %v2056_v7 = vmul.f32 0.5, %v3935_v62 }
 0x6c8   : > { %v2081_v41 = vmul.f32 %v2080_v37, %v2061_v24  ;;  %v2117_v43 = vmul.f32 %v2116_v38, %v2101_v61  ;;  %v2106_v44 = vmul.f32 %v2105_v17, %v2101_v61  ;;  %v2908_v17 = vld [vmem:[%s4016_s11] ss:$0 sm:$0xff] }
 0x6c9   : > { %v2070_v27 = vmul.f32 %v2069_v34, %v2061_v24 }
 0x6ca   : > { %v2082_v45 = vadd.f32 1.0, %v2081_v41  ;;  %v2118_v23 = vadd.f32 0.112945676, %v2117_v43  ;;  %v2107_v47 = vadd.f32 0.05243302, %v2106_v44 }
 0x6cb   : > { %v2071_v3 = vadd.f32 1.1283791, %v2070_v27 }
 0x6cc   : > { %2981 = vrcp.f32 %v2082_v45  ;;  %v2119_v48 = vmul.f32 %v2118_v23, %v2101_v61  ;;  %v2108_v18 = vmul.f32 %v2107_v47, %v2101_v61  ;;  %v2094_v33 = vand.u32 2147483648, %v2082_v45 }
 0x6cd   : > { %v2092_v4 = vand.u32 2147483647, %v2082_v45  ;;  %vm2088_vm1 = vweird.f32 %v2082_v45  ;;  %v2072_v36 = vmul.f32 %v2071_v3, %v3938_v63 }
 0x6ce   : > { %v2120_v19 = vadd.f32 0.4994258, %v2119_v48  ;;  %v2109_v59 = vadd.f32 0.18741608, %v2108_v18  ;;  %v2095_v49 = vor.u32 1.1754944e-38, %v2094_v33 }
 0x6cf   : > { %vm2093_vm3 = vcmp.eq.f32.partialorder %v2092_v4, 8.507059e+37 }
 0x6d0   : > { %v2121_v51 = vmul.f32 %v2120_v19, %v2101_v61  ;;  %v2110_v10 = vmul.f32 %v2109_v59, %v2101_v61  ;;  %v2909_v59 = vld [vmem:[%s4053_s27] ss:$0 sm:$0xff] }
 0x6d2   : > { %v2982_v58 = vpop.eup %2981  ;;  %v2122_v29 = vadd.f32 1.0, %v2121_v51  ;;  %v2111_v24 = vadd.f32 1.1283791, %v2110_v10 }
 0x6d3   : > { %v2084_v20 = vmul.f32 %v2982_v58, %v2082_v45  ;;  %vm2089_vm0 = vweird.f32 %v2982_v58 }
 0x6d4   : > { %2983 = vrcp.f32 %v2122_v29  ;;  %vm2090_vm2 = vmor %vm2088_vm1, %vm2089_vm0  ;;  %v2134_v21 = vand.u32 2147483648, %v2122_v29  ;;  %v2132_v25 = vand.u32 2147483647, %v2122_v29  ;;  %vm2128_vm5 = vweird.f32 %v2122_v29 }
 0x6d5   : > { %v2085_v50 = vsub.f32 1.0, %v2084_v20  ;;  %v2112_v28 = vmul.f32 %v2111_v24, %v3945_v14 }
 0x6d6   : > { %v2135_v5 = vor.u32 1.1754944e-38, %v2134_v21  ;;  %vm2133_vm7 = vcmp.eq.f32.partialorder %v2132_v25, 8.507059e+37 }
 0x6d7   : > { %v2086_v2 = vmul.f32 %v2982_v58, %v2085_v50 }
 0x6d9   : > { %v2087_v1 = vadd.f32 %v2982_v58, %v2086_v2 }
 0x6da   : > { %v2984_v6 = vpop.eup %2983 }
 0x6db   : > { %v2091_v39 = vsel %vm2090_vm2, %v2982_v58, %v2087_v1  ;;  %v2124_v12 = vmul.f32 %v2984_v6, %v2122_v29  ;;  %vm2129_vm4 = vweird.f32 %v2984_v6  ;;  %v2910_v1 = vld [vmem:[%s4054_s15] ss:$0 sm:$0xff] }
 0x6dc   : > { %v2096_v13 = vsel %vm2093_vm3, %v2095_v49, %v2091_v39  ;;  %vm2130_vm6 = vmor %vm2128_vm5, %vm2129_vm4 }
 0x6dd   : > { %v2125_v54 = vsub.f32 1.0, %v2124_v12  ;;  %v2097_v22 = vmul.f32 %v2096_v13, %v2072_v36 }
 0x6df   : > { %v2126_v8 = vmul.f32 %v2984_v6, %v2125_v54  ;;  %v2658_v26 = vclamps-f32 %v2097_v22, 1.0 }
 0x6e1   : > { %v2127_v52 = vadd.f32 %v2984_v6, %v2126_v8  ;;  %v2140_v60 = vadd.f32 1.0, %v2658_v26 }
 0x6e3   : > { %v2131_v61 = vsel %vm2130_vm6, %v2984_v6, %v2127_v52  ;;  %v2142_v9 = vmul.f32 %v2140_v60, %v2056_v7 }
 0x6e4   : > { %v2136_v16 = vsel %vm2133_vm7, %v2135_v5, %v2131_v61 }
 0x6e5   : > { %v2137_v31 = vmul.f32 %v2136_v16, %v2112_v28 }
 0x6e7   : > { %v2659_v63 = vclamps-f32 %v2137_v31, 1.0 }
 0x6e9   : > { %v2141_v35 = vadd.f32 1.0, %v2659_v63 }
 0x6eb   : > { %v2143_v11 = vmul.f32 %v2141_v35, %v2057_v32 }
 0x6ed   : > { %v2144_v37 = vpack.c.bf16 %v2143_v11, %v2142_v9 }
 0x6ef   : > { %2221 = vmatmul.bf16.vlgmr.msrb.gmra.mxu3 %v2144_v37 }
 0x772   : > { %v2222_v14 = vpop.f32.mrf.mxu3 }
 0x773   : > { %v2223_v38 = vadd.f32 %v2908_v17, %v2222_v14 }
 0x775   : > { %v2227_v41 = vadd.f32 %v2223_v38, %v3926_v53 }
 0x777   : > { %2231 = vadd.xlane.f32.xlu2 %v2227_v41 }
 0x77a   : > { %v2224_v40 = vpop.f32.mrf.mxu3 }
 0x77b   : > { %v2225_v43 = vadd.f32 %v2908_v17, %v2224_v40 }
 0x77d   : > { %v2228_v62 = vadd.f32 %v2225_v43, %v3928_v57 }
 0x77f   : > { %2233 = vadd.xlane.f32.xlu1 %v2228_v62 }
 0x7ea   : > { %v2232_v15 = vpop.xlane.xlu2 %2231 }
 0x7eb   : > { %v2235_v42 = vmul.f32 %v2232_v15, %v3914_v56 }
 0x7ed   : > { %v2237_v45 = vsub.f32 %v2227_v41, %v2235_v42 }
 0x7ef   : > { %v2239_v44 = vmul.f32 %v2237_v45, %v2237_v45 }
 0x7f1   : > { %2241 = vadd.xlane.f32.xlu0 %v2239_v44 }
 0x7f2   : > { %v2234_v23 = vpop.xlane.xlu1 %2233 }
 0x7f3   : > { %v2236_v46 = vmul.f32 %v2234_v23, %v3914_v56 }
 0x7f5   : > { %v2238_v48 = vsub.f32 %v2228_v62, %v2236_v46 }
 0x7f7   : > { %v2240_v0 = vmul.f32 %v2238_v48, %v2238_v48 }
 0x7f9   : > { %2243 = vadd.xlane.f32.xlu2 %v2240_v0 }
 0x864   : > { %v2242_v47 = vpop.xlane.xlu0 %2241 }
 0x865   : > { %v2245_v53 = vmul.f32 %v2242_v47, %v3914_v56 }
 0x867   : > { %v2247_v19 = vadd.f32 1e-05, %v2245_v53 }
 0x869   : > { %2985 = vrsqrt.f32 %v2247_v19  ;;  %vm2255_vm9 = vweird.f32 %v2247_v19 }
 0x86c   : > { %v2244_v51 = vpop.xlane.xlu2 %2243 }
 0x86d   : > { %v2246_v57 = vmul.f32 %v2244_v51, %v3914_v56 }
 0x86f   : > { %v2986_v58 = vpop.eup %2985  ;;  %v2248_v34 = vadd.f32 1e-05, %v2246_v57 }
 0x870   : > { %v2250_v20 = vmul.f32 %v2986_v58, %v2247_v19  ;;  %vm2256_vm8 = vweird.f32 %v2986_v58 }
 0x871   : > { %2987 = vrsqrt.f32 %v2248_v34  ;;  %vm2257_vm10 = vmor %vm2255_vm9, %vm2256_vm8  ;;  %vm2265_vm12 = vweird.f32 %v2248_v34 }
 0x872   : > { %v2251_v18 = vmul.f32 %v2986_v58, %v2250_v20 }
 0x874   : > { %v2252_v29 = vmul.f32 0.5, %v2251_v18 }
 0x876   : > { %v2253_v50 = vsub.f32 1.5, %v2252_v29 }
 0x877   : > { %v2988_v27 = vpop.eup %2987 }
 0x878   : > { %v2254_v2 = vmul.f32 %v2986_v58, %v2253_v50  ;;  %v2260_v33 = vmul.f32 %v2988_v27, %v2248_v34  ;;  %vm2266_vm11 = vweird.f32 %v2988_v27 }
 0x879   : > { %vm2267_vm13 = vmor %vm2265_vm12, %vm2266_vm11 }
 0x87a   : > { %v2258_v4 = vsel %vm2257_vm10, %v2986_v58, %v2254_v2  ;;  %v2261_v56 = vmul.f32 %v2988_v27, %v2260_v33 }
 0x87b   : > { %v2269_v3 = vmul.f32 %v2258_v4, %v2237_v45 }
 0x87c   : > { %v2262_v6 = vmul.f32 0.5, %v2261_v56 }
 0x87d   : > { %v2274_v39 = vmul.f32 %v2909_v59, %v2269_v3 }
 0x87e   : > { %v2263_v49 = vsub.f32 1.5, %v2262_v6 }
 0x87f   : > { %v2279_v10 = vadd.f32 %v2910_v1, %v2274_v39 }
 0x880   : > { %v2264_v12 = vmul.f32 %v2988_v27, %v2263_v49 }
 0x881   : > { %v2281_v13 = vadd.f32 %v3907_v30, %v2279_v10 }
 0x882   : > { %v2268_v36 = vsel %vm2267_vm13, %v2988_v27, %v2264_v12 }
 0x883   : > { %v2270_v54 = vmul.f32 %v2268_v36, %v2238_v48  ;;  %2283 = vst [vmem:[%s608_s24] sm:$0xff] %v2281_v13 }
 0x885   : > { %v2275_v24 = vmul.f32 %v2909_v59, %v2270_v54 }
 0x887   : > { %v2280_v21 = vadd.f32 %v2910_v1, %v2275_v24 }
 0x889   : > { %v2282_v22 = vadd.f32 %v3911_v55, %v2280_v21 }
 0x88b   : > { %2284 = vst [vmem:[%s608_s24 + $0x8] sm:$0xff] %v2282_v22 }
 0x88c   : > { %3228 = shalt.err (!%p3225_p8)
}
 0x88d   : > { %s3306_s22 = smov 128   ;;  %s3307_s26 = smov 8  }
 0x88e   : > { %2771 = dma.vmem_to_hbm [thread:$0]  (%p3473_p0), %s2299_s3, 256, %s2301_s8, %s2286_s20, %s3306_s22, %s3306_s22, %s3307_s26  }
 0x88f PF: > { %s4056_s27 = sld [smem:[#allocation21_spill]]  ;;  %p4058_p10 = scmp.ge.s32.totalorder %s3283_s16, 2 }
 0x891   : > { %p2797_p11 = pnand %p4058_p10, %p3481_p6 }
 0x893   : > { %p2798_p12 = pneg %p2797_p11 }
 0x895   : > { %s2315_s28 = sand.u32 1, %s4056_s27  }
 0x896   : > { %s2316_s15 = scalar_lea.sflag [#allocation4], %s2315_s28 }
 0x897   : > { %3266 = dma.done.wait (%p2798_p12), %s2316_s15, 256  }
 0x898   : > { %3268 = vsyncadd (%p2798_p12), %s2316_s15, 4294967040  ;;  %s4059_s16 = sld [smem:[#allocation23_spill]]  ;;  %s4062_s29 = smov %s3275_s30 }
 0x899   : > { %s4060_s18 = sld [smem:[#allocation22_spill]] }
 0x89a   : > { %s4061_s15 = sld [smem:[#allocation24_spill]] }
 0x89e   : > { %p32_p2 = scmp.ge.s32.totalorder %s4059_s16, 4  }
 0x89f   : > { %s4063_s30 = smov %s4060_s18 }
 0x8a0   :  { %34 = sbr.rel (!%p32_p2) target bundleno = 19 (0x13), region = 154 }
 0x8a5   :  { %2322 = vsyncpa [#allocation3], 1 }
 0x8a6   :  { %2324 = vsyncpa [#allocation3 + $0x1], 1 }
 0x8a7   :  { %2325 = vsyncpa [#allocation6], 1 }
 0x8a8   :  { %2327 = vsyncpa [#allocation6 + $0x1], 1 }
 0x8a9   :  { %2328 = vsyncpa [#allocation9], 1 }
 0x8aa   :  { %2329 = vsyncpa [#allocation12], 1 }
 0x8ab   :  { %2330 = vsyncpa [#allocation4], 1 }
 0x8ac   :  { %2332 = vsyncpa [#allocation4 + $0x1], 1 }

</bundles_post_ra>
